<compile_context>
chip_gen: v7x
topology: tpu7x:2x2x1
jax: 0.10.0
libtpu: 0.0.40
codegen_flags: <defaults>
</compile_context>

<pallas_src>
import jax
import jax.numpy as jnp
from jax.experimental import pallas as pl
from jax.experimental.pallas import tpu as pltpu


def se_gate_kernel(s_ref, w_ref, b_ref, x_ref, o_ref):
    # s_ref: (Cin, 1)        squeeze vector (resident across grid steps)
    # w_ref: (TC, Cin)       conv weight chunk, natural (Cout, Cin) layout
    # b_ref: (TC, 1)         bias chunk (column)
    # x_ref: (TC, HW)        main feature-map chunk
    # z = W_chunk @ s  -> (TC, 1) column; tiny matvec on the MXU.
    z = jnp.dot(w_ref[...], s_ref[...], preferred_element_type=jnp.float32)
    z = z + b_ref[...]
    # Exact sigmoid (exp on EUP + true divide).  Stable for any z:
    #   z -> -inf : exp(-z)=inf, 1/(1+inf)=0 ; z -> +inf : exp(-z)=0, gate=1.
    gate = 1.0 / (1.0 + jnp.exp(-z))                      # (TC, 1)
    # Broadcast multiply over the spatial (lane) axis.
    o_ref[...] = gate.astype(x_ref.dtype) * x_ref[...]


def se_gate(x_gate, x_main, w, b, *, c_chunks=2):
    """x_gate: (1, Cin, 1, 1), x_main: (1, Cout, H, W), w: (Cout, Cin, 1, 1), b: (Cout,)."""
    assert x_gate.shape[0] == 1 and x_main.shape[0] == 1
    Cin = x_gate.shape[1]
    _, Cout, H, W = x_main.shape
    HW = H * W
    assert Cout % c_chunks == 0
    tc = Cout // c_chunks
    assert tc % 8 == 0  # sublane multiple

    # No transpose anywhere in the wrapper — all reshapes are layout no-ops.
    s_col = x_gate.reshape(Cin, 1).astype(jnp.float32)     # (Cin, 1)
    w2d = w.reshape(Cout, Cin).astype(jnp.float32)         # (Cout, Cin) natural
    b_col = b.reshape(Cout, 1).astype(jnp.float32)         # (Cout, 1)
    x2d = x_main.reshape(Cout, HW)                         # (Cout, HW) natural NCHW slab

    itemsize = jnp.dtype(x_main.dtype).itemsize
    cost = pl.CostEstimate(
        flops=2 * Cin * Cout + 3 * Cout + Cout * HW,
        transcendentals=Cout,
        bytes_accessed=2 * itemsize * Cout * HW + 4 * (Cin * Cout + Cout + Cin),
    )

    out2d = pl.pallas_call(
        se_gate_kernel,
        out_shape=jax.ShapeDtypeStruct((Cout, HW), x_main.dtype),
        grid=(c_chunks,),
        in_specs=[
            pl.BlockSpec((Cin, 1), lambda i: (0, 0)),      # s: resident, full array
            pl.BlockSpec((tc, Cin), lambda i: (i, 0)),     # W chunk
            pl.BlockSpec((tc, 1), lambda i: (i, 0)),       # b chunk
            pl.BlockSpec((tc, HW), lambda i: (i, 0)),      # x chunk (full lane width)
        ],
        out_specs=pl.BlockSpec((tc, HW), lambda i: (i, 0)),
        compiler_params=pltpu.CompilerParams(
            dimension_semantics=("parallel",),             # 2-TC split on v7x
        ),
        cost_estimate=cost,
    )(s_col, w2d, b_col, x2d)

    return out2d.reshape(1, Cout, H, W)


if __name__ == "__main__":
    key = jax.random.PRNGKey(0)
    k1, k2, k3, k4 = jax.random.split(key, 4)

    Cin, Cout, H, W = 40, 960, 14, 14

    # Inputs matching the PyTorch module's shapes.
    x182 = jax.random.normal(k1, (1, Cin, 1, 1), dtype=jnp.float32)   # squeeze input
    x179 = jax.random.normal(k2, (1, Cout, H, W), dtype=jnp.float32)  # main feature map

    # Deterministic parameter init for Conv2d(40, 960, kernel_size=1).
    w = jax.random.normal(k3, (Cout, Cin, 1, 1), dtype=jnp.float32) * 0.05
    b = jax.random.normal(k4, (Cout,), dtype=jnp.float32) * 0.05

    out = se_gate(x182, x179, w, b)
    out = jax.block_until_ready(out)

    # Reference check (plain JAX) — exact sigmoid in-kernel, so tight tolerance.
    z_ref = w.reshape(Cout, Cin) @ x182.reshape(Cin, 1) + b.reshape(Cout, 1)
    ref = jax.nn.sigmoid(z_ref).reshape(1, Cout, 1, 1) * x179
    assert out.shape == (1, Cout, H, W)
    assert jnp.allclose(out, ref, atol=1e-4, rtol=1e-4)

    print("KERNEL_OK")
</pallas_src>

<mosaic_0001>
module attributes {stable_mosaic.version = 11 : i64} {
  func.func @se_gate_kernel(%arg0: i32, %arg1: memref<40x1xf32, #tpu.memory_space<vmem>>, %arg2: memref<480x40xf32, #tpu.memory_space<vmem>>, %arg3: memref<480x1xf32, #tpu.memory_space<vmem>>, %arg4: memref<480x196xf32, #tpu.memory_space<vmem>>, %arg5: memref<480x196xf32, #tpu.memory_space<vmem>>) attributes {dimension_semantics = [#tpu.dimension_semantics<parallel>], iteration_bounds = array<i64: 2>, scalar_prefetch = 0 : i64, scratch_operands = 0 : i64, tpu.core_type = #tpu.core_type<tc>, window_params = [{pipeline_mode = #tpu.pipeline_mode<synchronous>, transform_indices = @transform_0, window_bounds = array<i64: 40, 1>}, {transform_indices = @transform_1, window_bounds = array<i64: 480, 40>}, {transform_indices = @transform_2, window_bounds = array<i64: 480, 1>}, {transform_indices = @transform_3, window_bounds = array<i64: 480, 196>}, {transform_indices = @transform_4, window_bounds = array<i64: 480, 196>}]} {
    %c0 = arith.constant 0 : index
    %c0_0 = arith.constant 0 : index
    %0 = vector.load %arg2[%c0, %c0_0] : memref<480x40xf32, #tpu.memory_space<vmem>>, vector<480x40xf32>
    %c0_1 = arith.constant 0 : index
    %c0_2 = arith.constant 0 : index
    %1 = vector.load %arg1[%c0_1, %c0_2] : memref<40x1xf32, #tpu.memory_space<vmem>>, vector<40x1xf32>
    %cst = arith.constant dense<0.000000e+00> : vector<480x1xf32>
    %2 = tpu.matmul %0, %1, %cst {dimension_numbers = #tpu.dot_dimension_numbers<[1], [0], [0], [1], [0, 0, 1, 1], [], []>} : vector<480x40xf32>, vector<40x1xf32>, vector<480x1xf32> -> vector<480x1xf32>
    %c0_3 = arith.constant 0 : index
    %c0_4 = arith.constant 0 : index
    %3 = vector.load %arg3[%c0_3, %c0_4] : memref<480x1xf32, #tpu.memory_space<vmem>>, vector<480x1xf32>
    %4 = arith.addf %2, %3 : vector<480x1xf32>
    %cst_5 = arith.constant 0.000000e+00 : f32
    %5 = vector.broadcast %cst_5 : f32 to vector<480x1xf32>
    %6 = arith.subf %5, %4 : vector<480x1xf32>
    %7 = math.exp %6 : vector<480x1xf32>
    %cst_6 = arith.constant 1.000000e+00 : f32
    %8 = vector.broadcast %cst_6 : f32 to vector<480x1xf32>
    %9 = arith.addf %8, %7 : vector<480x1xf32>
    %cst_7 = arith.constant 1.000000e+00 : f32
    %10 = vector.broadcast %cst_7 : f32 to vector<480x1xf32>
    %11 = arith.divf %10, %9 : vector<480x1xf32>
    %c0_8 = arith.constant 0 : index
    %c0_9 = arith.constant 0 : index
    %12 = vector.load %arg4[%c0_8, %c0_9] : memref<480x196xf32, #tpu.memory_space<vmem>>, vector<480x196xf32>
    %13 = vector.broadcast %11 : vector<480x1xf32> to vector<480x196xf32>
    %14 = arith.mulf %13, %12 : vector<480x196xf32>
    %c0_10 = arith.constant 0 : index
    %c0_11 = arith.constant 0 : index
    %15 = vector.load %arg5[%c0_10, %c0_11] : memref<480x196xf32, #tpu.memory_space<vmem>>, vector<480x196xf32>
    tpu.vector_store %arg5[%c0_10, %c0_11], %14 {strides = array<i32>} : memref<480x196xf32, #tpu.memory_space<vmem>>, vector<480x196xf32>,
    return
  }
  func.func @transform_0(%arg0: i32) -> (i32, i32) {
    %c0_i32 = arith.constant 0 : i32
    %c0_i32_0 = arith.constant 0 : i32
    %c0_i32_1 = arith.constant 0 : i32
    return %c0_i32, %c0_i32_0 : i32, i32
  }
  func.func @transform_1(%arg0: i32) -> (i32, i32) {
    %c0_i32 = arith.constant 0 : i32
    %c0_i32_0 = arith.constant 0 : i32
    return %arg0, %c0_i32 : i32, i32
  }
  func.func @transform_2(%arg0: i32) -> (i32, i32) {
    %c0_i32 = arith.constant 0 : i32
    %c0_i32_0 = arith.constant 0 : i32
    return %arg0, %c0_i32 : i32, i32
  }
  func.func @transform_3(%arg0: i32) -> (i32, i32) {
    %c0_i32 = arith.constant 0 : i32
    %c0_i32_0 = arith.constant 0 : i32
    return %arg0, %c0_i32 : i32, i32
  }
  func.func @transform_4(%arg0: i32) -> (i32, i32) {
    %c0_i32 = arith.constant 0 : i32
    %c0_i32_0 = arith.constant 0 : i32
    return %arg0, %c0_i32 : i32, i32
  }
}

</mosaic_0001>

<bundles_post_ra>
// kernel: tpu_custom_call.1
= control target key start
LH: loop header
LB: loop body
LE: loop exit
PB: predicated region body
PF: predicated region fallthrough
CT: control target
= control target key end

     0   :  { %s2563_s15 = smov 0   ;;  %s3220_s0 = inlined_call_operand.vmem [shape: f32[40,1], index: 0, kind: input, shape index: {}]   ;;  %s3221_s1 = inlined_call_operand.vmem [shape: f32[960,40], index: 1, kind: input, shape index: {}]   ;;  %s3222_s2 = inlined_call_operand.vmem [shape: f32[960,1], index: 2, kind: input, shape index: {}]   ;;  %s3223_s3 = inlined_call_operand.vmem [shape: f32[960,196], index: 3, kind: input, shape index: {}]   ;;  %s3224_s4 = inlined_call_operand.vmem [shape: f32[960,196], index: 4, kind: output, shape index: {}]  }
   0x1 LB: > { %s2024_s16 = sadd.s32 4294967295, %s2535_s15   ;;  %p2028_p0 = scmp.ge.s32.totalorder %s2535_s15, 1  ;;  %s2535_s15 = sphi %s2563_s15, %s14_s15  }
   0x2   : > { %p186_p1 = scmp.lt.s32.totalorder %s2535_s15, 3 }
   0x4   : > { %p187_p2 = pnand %p2028_p0, %p186_p1 }
   0x5   : > { %v310_v0 = vld [vmem:[%s3220_s0] sm:$0xff] (!%p187_p2)  ;;  %v311_v1 = vld [vmem:[%s3220_s0 + $0x8] sm:$0xff] (!%p187_p2)  ;;  %v312_v2 = vld [vmem:[%s3220_s0 + $0x10] sm:$0xff] (!%p187_p2)  ;;  %s224_s23 = smul.u32 (!%p187_p2), 60, %s2024_s16  ;;  %vm375_vm0 = vcmask (!%p187_p2), 326656   ;;  %vm1822_vm1 = vcmask (!%p187_p2), 556032  }
   0x6   : > { %190 = sbr.rel (%p187_p2) target bundleno = 512 (0x200), region = 36  ;;  %v2264_v3 = vpack.c.bf16 (!%p187_p2), %v311_v1, %v310_v0  ;;  %v313_v4 = vld [vmem:[%s3220_s0 + $0x18] sm:$0xff] (!%p187_p2)  ;;  %v314_v6 = vld [vmem:[%s3220_s0 + $0x20] sm:$0xff] (!%p187_p2) }
   0x7   : > { %v2268_v5 = vpack.c.bf16 (!%p187_p2), %v313_v4, %v312_v2  ;;  %p225_p3 = scmp.lt.s32.totalorder (!%p187_p2), %s224_s23, 119 }
   0x8   : > { %2265 = vmatprep.subr.bf16.mxu0 (!%p187_p2), %v2264_v3  ;;  %2272 = vmatprep.subr.bf16.mxu1 (!%p187_p2), %v2264_v3 }
   0x9   : > { %2267 = vmatpush3.bf16.msra.mxu0 (!%p187_p2), %v2264_v3  ;;  %2275 = vmatpush3.bf16.msra.mxu1 (!%p187_p2), %v2264_v3  ;;  %v2537_v3 = vmov (!%p187_p2), 0  }
   0xa   : > { %2269 = vmatprep.subr.bf16.mxu0 (!%p187_p2), %v2268_v5  ;;  %2273 = vmatprep.subr.bf16.mxu1 (!%p187_p2), %v2268_v5 }
   0xb   : > { %2288 = vset.pattern.permute.xlu1 (!%p187_p2), %v2537_v3  ;;  %2287 = vset.pattern.permute.xlu0 (!%p187_p2), %v2537_v3 }
   0xd   : > { %s3226_s23 = smov (!%p225_p3, %s224_s23), 119  ;;  %2271 = vmatpush3.bf16.msra.mxu0 %v2268_v5  ;;  %2276 = vmatpush3.bf16.msra.mxu1 %v2268_v5 }
   0xe   : > { %s2029_s28 = sshll.u32 %s3226_s23, 3  ;;  %2172 = vmatprep.subr.mxu0 %v314_v6  ;;  %2274 = vmatprep.subr.mxu1 %v314_v6  ;;  %s2097_s9 = sshll.u32 %s3226_s23, 4 }
   0xf   : > { %s2594_s5 = scalar_lea.vmem %s3221_s1, %s2029_s28  ;;  %s2721_s8 = scalar_lea.vmem %s3222_s2, %s2029_s28 }
  0x10   : > { %v250_v7 = vld [vmem:[%s2594_s5] sm:$0xff]  ;;  %v280_v8 = vld [vmem:[%s2594_s5 + $0xf0] sm:$0xff]  ;;  %v251_v9 = vld [vmem:[%s2594_s5 + $0x8] sm:$0xff]  ;;  %s2910_s12 = scalar_lea.vmem %s3223_s3, %s2097_s9  ;;  %s2919_s16 = scalar_lea.vmem %s3224_s4, %s2097_s9 }
  0x11   : > { %2174 = vmatprep.mubr.msk.f32.mxu0 %vm375_vm0, %v250_v7  ;;  %2219 = vmatprep.mubr.msk.f32.mxu1 %vm375_vm0, %v280_v8  ;;  %v281_v10 = vld [vmem:[%s2594_s5 + $0xf8] sm:$0xff]  ;;  %v252_v11 = vld [vmem:[%s2594_s5 + $0x10] sm:$0xff]  ;;  %v282_v12 = vld [vmem:[%s2594_s5 + $0x100] sm:$0xff] }
  0x12   : > { %2173 = vmatpush3.msra.mxu0 %v314_v6  ;;  %2277 = vmatpush3.msra.mxu1 %v314_v6  ;;  %v253_v13 = vld [vmem:[%s2594_s5 + $0x18] sm:$0xff]  ;;  %v283_v14 = vld [vmem:[%s2594_s5 + $0x108] sm:$0xff]  ;;  %v254_v15 = vld [vmem:[%s2594_s5 + $0x20] sm:$0xff] }
  0x13   : > { %2175 = vmatmul.mubr.msk.f32.vlgmr.msra.gmra.mrb[0].mxu0 %vm375_vm0, %v251_v9  ;;  %2220 = vmatmul.mubr.msk.f32.vlgmr.msra.gmra.mrb[0].mxu1 %vm375_vm0, %v281_v10  ;;  %v284_v16 = vld [vmem:[%s2594_s5 + $0x110] sm:$0xff]  ;;  %v255_v17 = vld [vmem:[%s2594_s5 + $0x28] sm:$0xff]  ;;  %v285_v18 = vld [vmem:[%s2594_s5 + $0x118] sm:$0xff] }
  0x14   : > { %2177 = vmatprep.mubr.msk.f32.mxu0 %vm375_vm0, %v252_v11  ;;  %2222 = vmatprep.mubr.msk.f32.mxu1 %vm375_vm0, %v282_v12  ;;  %v256_v19 = vld [vmem:[%s2594_s5 + $0x30] sm:$0xff]  ;;  %v286_v20 = vld [vmem:[%s2594_s5 + $0x120] sm:$0xff]  ;;  %v257_v21 = vld [vmem:[%s2594_s5 + $0x38] sm:$0xff] }
  0x15   : > { %v287_v22 = vld [vmem:[%s2594_s5 + $0x128] sm:$0xff]  ;;  %v258_v23 = vld [vmem:[%s2594_s5 + $0x40] sm:$0xff]  ;;  %v288_v24 = vld [vmem:[%s2594_s5 + $0x130] sm:$0xff] }
  0x16   : > { %v259_v25 = vld [vmem:[%s2594_s5 + $0x48] sm:$0xff]  ;;  %v289_v26 = vld [vmem:[%s2594_s5 + $0x138] sm:$0xff]  ;;  %v260_v27 = vld [vmem:[%s2594_s5 + $0x50] sm:$0xff] }
  0x17   : > { %2178 = vmatmul.mubr.msk.f32.gmra.mrb[2].mxu0 %vm375_vm0, %v253_v13  ;;  %2223 = vmatmul.mubr.msk.f32.gmra.mrb[2].mxu1 %vm375_vm0, %v283_v14  ;;  %v290_v28 = vld [vmem:[%s2594_s5 + $0x140] sm:$0xff]  ;;  %v261_v29 = vld [vmem:[%s2594_s5 + $0x58] sm:$0xff]  ;;  %v291_v30 = vld [vmem:[%s2594_s5 + $0x148] sm:$0xff] }
  0x18   : > { %2180 = vmatprep.mubr.msk.f32.mxu0 %vm375_vm0, %v254_v15  ;;  %2225 = vmatprep.mubr.msk.f32.mxu1 %vm375_vm0, %v284_v16  ;;  %v262_v31 = vld [vmem:[%s2594_s5 + $0x60] sm:$0xff]  ;;  %v292_v32 = vld [vmem:[%s2594_s5 + $0x150] sm:$0xff]  ;;  %v263_v33 = vld [vmem:[%s2594_s5 + $0x68] sm:$0xff] }
  0x19   : > { %v293_v34 = vld [vmem:[%s2594_s5 + $0x158] sm:$0xff]  ;;  %v264_v35 = vld [vmem:[%s2594_s5 + $0x70] sm:$0xff]  ;;  %v294_v36 = vld [vmem:[%s2594_s5 + $0x160] sm:$0xff] }
  0x1a   : > { %v265_v37 = vld [vmem:[%s2594_s5 + $0x78] sm:$0xff]  ;;  %v295_v38 = vld [vmem:[%s2594_s5 + $0x168] sm:$0xff]  ;;  %v266_v39 = vld [vmem:[%s2594_s5 + $0x80] sm:$0xff] }
  0x1b   : > { %2181 = vmatmul.mubr.msk.f32.gmra.mrb[4].mxu0 %vm375_vm0, %v255_v17  ;;  %2226 = vmatmul.mubr.msk.f32.gmra.mrb[4].mxu1 %vm375_vm0, %v285_v18  ;;  %v296_v40 = vld [vmem:[%s2594_s5 + $0x170] sm:$0xff]  ;;  %v267_v41 = vld [vmem:[%s2594_s5 + $0x88] sm:$0xff]  ;;  %v297_v42 = vld [vmem:[%s2594_s5 + $0x178] sm:$0xff] }
  0x1c   : > { %2183 = vmatprep.mubr.msk.f32.mxu0 %vm375_vm0, %v256_v19  ;;  %2228 = vmatprep.mubr.msk.f32.mxu1 %vm375_vm0, %v286_v20  ;;  %v268_v43 = vld [vmem:[%s2594_s5 + $0x90] sm:$0xff]  ;;  %v298_v44 = vld [vmem:[%s2594_s5 + $0x180] sm:$0xff]  ;;  %v269_v45 = vld [vmem:[%s2594_s5 + $0x98] sm:$0xff] }
  0x1d   : > { %v299_v46 = vld [vmem:[%s2594_s5 + $0x188] sm:$0xff]  ;;  %v270_v47 = vld [vmem:[%s2594_s5 + $0xa0] sm:$0xff]  ;;  %v300_v48 = vld [vmem:[%s2594_s5 + $0x190] sm:$0xff] }
  0x1e   : > { %v271_v49 = vld [vmem:[%s2594_s5 + $0xa8] sm:$0xff]  ;;  %v301_v50 = vld [vmem:[%s2594_s5 + $0x198] sm:$0xff]  ;;  %v272_v51 = vld [vmem:[%s2594_s5 + $0xb0] sm:$0xff] }
  0x1f   : > { %2184 = vmatmul.mubr.msk.f32.gmra.mrb[6].mxu0 %vm375_vm0, %v257_v21  ;;  %2229 = vmatmul.mubr.msk.f32.gmra.mrb[6].mxu1 %vm375_vm0, %v287_v22  ;;  %v302_v52 = vld [vmem:[%s2594_s5 + $0x1a0] sm:$0xff]  ;;  %v273_v53 = vld [vmem:[%s2594_s5 + $0xb8] sm:$0xff]  ;;  %v303_v54 = vld [vmem:[%s2594_s5 + $0x1a8] sm:$0xff] }
  0x20   : > { %2186 = vmatprep.mubr.msk.f32.mxu0 %vm375_vm0, %v258_v23  ;;  %2231 = vmatprep.mubr.msk.f32.mxu1 %vm375_vm0, %v288_v24  ;;  %v274_v55 = vld [vmem:[%s2594_s5 + $0xc0] sm:$0xff]  ;;  %v304_v56 = vld [vmem:[%s2594_s5 + $0x1b0] sm:$0xff]  ;;  %v275_v57 = vld [vmem:[%s2594_s5 + $0xc8] sm:$0xff] }
  0x21   : > { %v305_v58 = vld [vmem:[%s2594_s5 + $0x1b8] sm:$0xff]  ;;  %v276_v59 = vld [vmem:[%s2594_s5 + $0xd0] sm:$0xff]  ;;  %v306_v60 = vld [vmem:[%s2594_s5 + $0x1c0] sm:$0xff] }
  0x22   : > { %v277_v61 = vld [vmem:[%s2594_s5 + $0xd8] sm:$0xff]  ;;  %v307_v62 = vld [vmem:[%s2594_s5 + $0x1c8] sm:$0xff]  ;;  %v278_v63 = vld [vmem:[%s2594_s5 + $0xe0] sm:$0xff] }
  0x23   : > { %2187 = vmatmul.mubr.msk.f32.gmra.mrb[8].mxu0 %vm375_vm0, %v259_v25  ;;  %2232 = vmatmul.mubr.msk.f32.gmra.mrb[8].mxu1 %vm375_vm0, %v289_v26  ;;  %v308_v0 = vld [vmem:[%s2594_s5 + $0x1d0] sm:$0xff]  ;;  %v279_v1 = vld [vmem:[%s2594_s5 + $0xe8] sm:$0xff]  ;;  %v309_v2 = vld [vmem:[%s2594_s5 + $0x1d8] sm:$0xff] }
  0x24   : > { %2189 = vmatprep.mubr.msk.f32.mxu0 %vm375_vm0, %v260_v27  ;;  %2234 = vmatprep.mubr.msk.f32.mxu1 %vm375_vm0, %v290_v28  ;;  %v316_v4 = vld [vmem:[%s2721_s8 + $0x8] sm:$0xff]  ;;  %v346_v5 = vld [vmem:[%s2721_s8 + $0xf8] sm:$0xff]  ;;  %v315_v6 = vld [vmem:[%s2721_s8] sm:$0xff] }
  0x25   : > { %v345_v7 = vld [vmem:[%s2721_s8 + $0xf0] sm:$0xff]  ;;  %v318_v16 = vld [vmem:[%s2721_s8 + $0x18] sm:$0xff]  ;;  %v348_v17 = vld [vmem:[%s2721_s8 + $0x108] sm:$0xff] }
  0x26   : > { %v317_v20 = vld [vmem:[%s2721_s8 + $0x10] sm:$0xff]  ;;  %v347_v21 = vld [vmem:[%s2721_s8 + $0x100] sm:$0xff] }
  0x27   : > { %2190 = vmatmul.mubr.msk.f32.gmra.mrb[10].mxu0 %vm375_vm0, %v261_v29  ;;  %2235 = vmatmul.mubr.msk.f32.gmra.mrb[10].mxu1 %vm375_vm0, %v291_v30 }
  0x28   : > { %2192 = vmatprep.mubr.msk.f32.mxu0 %vm375_vm0, %v262_v31  ;;  %2237 = vmatprep.mubr.msk.f32.mxu1 %vm375_vm0, %v292_v32 }
  0x2b   : > { %2193 = vmatmul.mubr.msk.f32.gmra.mrb[12].mxu0 %vm375_vm0, %v263_v33  ;;  %2238 = vmatmul.mubr.msk.f32.gmra.mrb[12].mxu1 %vm375_vm0, %v293_v34 }
  0x2c   : > { %2195 = vmatprep.mubr.msk.f32.mxu0 %vm375_vm0, %v264_v35  ;;  %2240 = vmatprep.mubr.msk.f32.mxu1 %vm375_vm0, %v294_v36  ;;  %v320_v36 = vld [vmem:[%s2721_s8 + $0x28] sm:$0xff] }
  0x2f   : > { %2196 = vmatmul.mubr.msk.f32.gmra.mrb[14].mxu0 %vm375_vm0, %v265_v37  ;;  %2241 = vmatmul.mubr.msk.f32.gmra.mrb[14].mxu1 %vm375_vm0, %v295_v38 }
  0x30   : > { %2198 = vmatprep.mubr.msk.f32.mxu0 %vm375_vm0, %v266_v39  ;;  %2243 = vmatprep.mubr.msk.f32.mxu1 %vm375_vm0, %v296_v40  ;;  %v319_v39 = vld [vmem:[%s2721_s8 + $0x20] sm:$0xff] }
  0x33   : > { %2199 = vmatmul.mubr.msk.f32.gmra.mrb[16].mxu0 %vm375_vm0, %v267_v41  ;;  %2244 = vmatmul.mubr.msk.f32.gmra.mrb[16].mxu1 %vm375_vm0, %v297_v42 }
  0x34   : > { %2201 = vmatprep.mubr.msk.f32.mxu0 %vm375_vm0, %v268_v43  ;;  %2246 = vmatprep.mubr.msk.f32.mxu1 %vm375_vm0, %v298_v44  ;;  %v350_v43 = vld [vmem:[%s2721_s8 + $0x118] sm:$0xff] }
  0x37   : > { %2202 = vmatmul.mubr.msk.f32.gmra.mrb[18].mxu0 %vm375_vm0, %v269_v45  ;;  %2247 = vmatmul.mubr.msk.f32.gmra.mrb[18].mxu1 %vm375_vm0, %v299_v46  ;;  %v349_v45 = vld [vmem:[%s2721_s8 + $0x110] sm:$0xff] }
  0x38   : > { %2204 = vmatprep.mubr.msk.f32.mxu0 %vm375_vm0, %v270_v47  ;;  %2249 = vmatprep.mubr.msk.f32.mxu1 %vm375_vm0, %v300_v48 }
  0x3b   : > { %2205 = vmatmul.mubr.msk.f32.gmra.mrb[20].mxu0 %vm375_vm0, %v271_v49  ;;  %2250 = vmatmul.mubr.msk.f32.gmra.mrb[20].mxu1 %vm375_vm0, %v301_v50 }
  0x3c   : > { %2207 = vmatprep.mubr.msk.f32.mxu0 %vm375_vm0, %v272_v51  ;;  %2252 = vmatprep.mubr.msk.f32.mxu1 %vm375_vm0, %v302_v52 }
  0x3f   : > { %2208 = vmatmul.mubr.msk.f32.gmra.mrb[22].mxu0 %vm375_vm0, %v273_v53  ;;  %2253 = vmatmul.mubr.msk.f32.gmra.mrb[22].mxu1 %vm375_vm0, %v303_v54 }
  0x40   : > { %2210 = vmatprep.mubr.msk.f32.mxu0 %vm375_vm0, %v274_v55  ;;  %2255 = vmatprep.mubr.msk.f32.mxu1 %vm375_vm0, %v304_v56 }
  0x43   : > { %2211 = vmatmul.mubr.msk.f32.gmra.mrb[24].mxu0 %vm375_vm0, %v275_v57  ;;  %2256 = vmatmul.mubr.msk.f32.gmra.mrb[24].mxu1 %vm375_vm0, %v305_v58 }
  0x44   : > { %2213 = vmatprep.mubr.msk.f32.mxu0 %vm375_vm0, %v276_v59  ;;  %2258 = vmatprep.mubr.msk.f32.mxu1 %vm375_vm0, %v306_v60 }
  0x47   : > { %2214 = vmatmul.mubr.msk.f32.gmra.mrb[26].mxu0 %vm375_vm0, %v277_v61  ;;  %2259 = vmatmul.mubr.msk.f32.gmra.mrb[26].mxu1 %vm375_vm0, %v307_v62 }
  0x48   : > { %2216 = vmatprep.mubr.msk.f32.mxu0 %vm375_vm0, %v278_v63  ;;  %2261 = vmatprep.mubr.msk.f32.mxu1 %vm375_vm0, %v308_v0 }
  0x4b   : > { %2217 = vmatmul.mubr.msk.f32.gmra.mrb[28].mxu0 %vm375_vm0, %v279_v1  ;;  %2262 = vmatmul.mubr.msk.f32.gmra.mrb[28].mxu1 %vm375_vm0, %v309_v2 }
  0xe6   : > { %v2176_v8 = vpop.f32.mrb[0].mxu0  ;;  %v2221_v9 = vpop.f32.mrb[0].mxu1 }
  0xe7   : > { %v628_v10 = vadd.f32 %v2176_v8, %v316_v4  ;;  %v778_v11 = vadd.f32 %v2221_v9, %v346_v5  ;;  %v622_v12 = vpop.f32.mrb[1].mxu0  ;;  %v772_v13 = vpop.f32.mrb[1].mxu1  ;;  %v322_v4 = vld [vmem:[%s2721_s8 + $0x38] sm:$0xff]  ;;  %v321_v5 = vld [vmem:[%s2721_s8 + $0x30] sm:$0xff]  ;;  %v352_v9 = vld [vmem:[%s2721_s8 + $0x128] sm:$0xff] }
  0xe8   : > { %v623_v14 = vadd.f32 %v622_v12, %v315_v6  ;;  %v773_v15 = vadd.f32 %v772_v13, %v345_v7 }
  0xe9   : > { %v922_v18 = vsub.f32 0.0, %v628_v10  ;;  %v952_v19 = vsub.f32 0.0, %v778_v11 }
  0xea   : > { %v921_v22 = vsub.f32 0.0, %v623_v14  ;;  %v951_v23 = vsub.f32 0.0, %v773_v15  ;;  %v2179_v24 = vpop.f32.mrb[2].mxu0  ;;  %v2224_v25 = vpop.f32.mrb[2].mxu1 }
  0xeb   : > { %v983_v26 = vmul.f32 1.442695, %v922_v18  ;;  %v1043_v27 = vmul.f32 1.442695, %v952_v19  ;;  %v638_v28 = vadd.f32 %v2179_v24, %v318_v16  ;;  %v632_v29 = vpop.f32.mrb[3].mxu0  ;;  %v788_v30 = vadd.f32 %v2224_v25, %v348_v17  ;;  %v782_v31 = vpop.f32.mrb[3].mxu1 }
  0xec   : > { %v981_v32 = vmul.f32 1.442695, %v921_v22  ;;  %v1041_v33 = vmul.f32 1.442695, %v951_v23  ;;  %v633_v34 = vadd.f32 %v632_v29, %v317_v20  ;;  %v783_v35 = vadd.f32 %v782_v31, %v347_v21  ;;  %v351_v21 = vld [vmem:[%s2721_s8 + $0x120] sm:$0xff] }
  0xed   : > { %2289 = vpow2.f32 %v983_v26  ;;  %v924_v37 = vsub.f32 0.0, %v638_v28  ;;  %v954_v38 = vsub.f32 0.0, %v788_v30  ;;  %v324_v26 = vld [vmem:[%s2721_s8 + $0x48] sm:$0xff] }
  0xee   : > { %2291 = vpow2.f32 %v1043_v27  ;;  %v923_v40 = vsub.f32 0.0, %v633_v34  ;;  %v953_v41 = vsub.f32 0.0, %v783_v35  ;;  %v2182_v42 = vpop.f32.mrb[4].mxu0  ;;  %v2227_v44 = vpop.f32.mrb[4].mxu1 }
  0xef   : > { %2293 = vpow2.f32 %v981_v32  ;;  %v987_v46 = vmul.f32 1.442695, %v924_v37  ;;  %v1047_v47 = vmul.f32 1.442695, %v954_v38  ;;  %v648_v48 = vadd.f32 %v2182_v42, %v320_v36  ;;  %v642_v49 = vpop.f32.mrb[5].mxu0  ;;  %v792_v50 = vpop.f32.mrb[5].mxu1 }
  0xf0   : > { %2295 = vpow2.f32 %v1041_v33  ;;  %v985_v51 = vmul.f32 1.442695, %v923_v40  ;;  %v1045_v52 = vmul.f32 1.442695, %v953_v41  ;;  %v643_v53 = vadd.f32 %v642_v49, %v319_v39  ;;  %v323_v32 = vld [vmem:[%s2721_s8 + $0x40] sm:$0xff]  ;;  %v354_v33 = vld [vmem:[%s2721_s8 + $0x138] sm:$0xff] }
  0xf1   : > { %2297 = vpow2.f32 %v987_v46  ;;  %v926_v54 = vsub.f32 0.0, %v648_v48  ;;  %v798_v55 = vadd.f32 %v2227_v44, %v350_v43  ;;  %v793_v56 = vadd.f32 %v792_v50, %v349_v45  ;;  %v353_v42 = vld [vmem:[%s2721_s8 + $0x130] sm:$0xff]  ;;  %v326_v49 = vld [vmem:[%s2721_s8 + $0x58] sm:$0xff] }
  0xf2   : > { %2299 = vpow2.f32 %v985_v51  ;;  %v925_v57 = vsub.f32 0.0, %v643_v53  ;;  %v2185_v58 = vpop.f32.mrb[6].mxu0  ;;  %v2230_v59 = vpop.f32.mrb[6].mxu1 }
  0xf3   : > { %2301 = vpow2.f32 %v1047_v47  ;;  %v991_v60 = vmul.f32 1.442695, %v926_v54  ;;  %v956_v61 = vsub.f32 0.0, %v798_v55  ;;  %v955_v62 = vsub.f32 0.0, %v793_v56  ;;  %v652_v63 = vpop.f32.mrb[7].mxu0  ;;  %v802_v0 = vpop.f32.mrb[7].mxu1 }
  0xf4   : > { %2303 = vpow2.f32 %v1045_v52  ;;  %v989_v1 = vmul.f32 1.442695, %v925_v57  ;;  %v658_v14 = vadd.f32 %v2185_v58, %v322_v4  ;;  %v653_v15 = vadd.f32 %v652_v63, %v321_v5  ;;  %v325_v56 = vld [vmem:[%s2721_s8 + $0x50] sm:$0xff] }
  0xf5   : > { %2305 = vpow2.f32 %v991_v60  ;;  %v1051_v2 = vmul.f32 1.442695, %v956_v61  ;;  %v1049_v3 = vmul.f32 1.442695, %v955_v62  ;;  %v2738_v20 = vadd.f32 %v2230_v59, %v352_v9  ;;  %v356_v61 = vld [vmem:[%s2721_s8 + $0x148] sm:$0xff] }
  0xf6   : > { %2307 = vpow2.f32 %v989_v1  ;;  %v2188_v6 = vpop.f32.mrb[8].mxu0  ;;  %v2233_v7 = vpop.f32.mrb[8].mxu1  ;;  %v928_v30 = vsub.f32 0.0, %v658_v14  ;;  %v927_v31 = vsub.f32 0.0, %v653_v15  ;;  %v803_v37 = vadd.f32 %v802_v0, %v351_v21 }
  0xf7   : > { %v2290_v8 = vpop.eup %2289  ;;  %2309 = vpow2.f32 %v1051_v2  ;;  %v662_v10 = vpop.f32.mrb[9].mxu0  ;;  %v958_v40 = vsub.f32 0.0, %v2738_v20  ;;  %v668_v41 = vadd.f32 %v2188_v6, %v324_v26  ;;  %v818_v48 = vadd.f32 %v2233_v7, %v354_v33  ;;  %v355_v2 = vld [vmem:[%s2721_s8 + $0x140] sm:$0xff] }
  0xf8   : > { %v812_v11 = vpop.f32.mrb[9].mxu1  ;;  %v2292_v12 = vpop.eup %2291  ;;  %v1102_v13 = vadd.f32 1.0, %v2290_v8  ;;  %2311 = vpow2.f32 %v1049_v3  ;;  %v663_v47 = vadd.f32 %v662_v10, %v323_v32  ;;  %v995_v54 = vmul.f32 1.442695, %v928_v30  ;;  %v328_v8 = vld [vmem:[%s2721_s8 + $0x68] sm:$0xff] }
  0xf9   : > { %v2294_v16 = vpop.eup %2293  ;;  %v1132_v17 = vadd.f32 1.0, %v2292_v12  ;;  %v993_v55 = vmul.f32 1.442695, %v927_v31  ;;  %v957_v59 = vsub.f32 0.0, %v803_v37  ;;  %v813_v60 = vadd.f32 %v812_v11, %v353_v42 }
  0xfa   : > { %v2296_v18 = vpop.eup %2295  ;;  %2313 = vrcp.f32 %v1102_v13  ;;  %v1101_v19 = vadd.f32 1.0, %v2294_v16  ;;  %v2191_v22 = vpop.f32.mrb[10].mxu0  ;;  %v930_v0 = vsub.f32 0.0, %v668_v41  ;;  %v929_v6 = vsub.f32 0.0, %v663_v47 }
  0xfb   : > { %v2741_v23 = vpop.f32.mrb[10].mxu1  ;;  %v2298_v24 = vpop.eup %2297  ;;  %2315 = vrcp.f32 %v1132_v17  ;;  %v1131_v25 = vadd.f32 1.0, %v2296_v18  ;;  %v678_v1 = vadd.f32 %v2191_v22, %v326_v49  ;;  %v1055_v12 = vmul.f32 1.442695, %v958_v40 }
  0xfc   : > { %v672_v27 = vpop.f32.mrb[11].mxu0  ;;  %v2300_v28 = vpop.eup %2299  ;;  %2317 = vrcp.f32 %v1101_v19  ;;  %v1104_v29 = vadd.f32 1.0, %v2298_v24  ;;  %v960_v13 = vsub.f32 0.0, %v818_v48  ;;  %v828_v14 = vadd.f32 %v2741_v23, %v356_v61 }
  0xfd   : > { %v822_v34 = vpop.f32.mrb[11].mxu1  ;;  %v2302_v35 = vpop.eup %2301  ;;  %2319 = vrcp.f32 %v1131_v25  ;;  %v1103_v36 = vadd.f32 1.0, %v2300_v28  ;;  %v673_v7 = vadd.f32 %v672_v27, %v325_v56  ;;  %v1053_v16 = vmul.f32 1.442695, %v957_v59 }
  0xfe   : > { %v2304_v38 = vpop.eup %2303  ;;  %2321 = vrcp.f32 %v1104_v29  ;;  %v1134_v39 = vadd.f32 1.0, %v2302_v35  ;;  %v2194_v43 = vpop.f32.mrb[12].mxu0  ;;  %v959_v17 = vsub.f32 0.0, %v813_v60  ;;  %v823_v18 = vadd.f32 %v822_v34, %v355_v2 }
  0xff   : > { %v2748_v44 = vpop.f32.mrb[12].mxu1  ;;  %v2306_v45 = vpop.eup %2305  ;;  %2323 = vrcp.f32 %v1103_v36  ;;  %v1133_v46 = vadd.f32 1.0, %v2304_v38  ;;  %v999_v20 = vmul.f32 1.442695, %v930_v0  ;;  %v932_v21 = vsub.f32 0.0, %v678_v1  ;;  %v357_v1 = vld [vmem:[%s2721_s8 + $0x150] sm:$0xff] }
 0x100   : > { %v2751_v50 = vpop.f32.mrb[13].mxu0  ;;  %v2753_v51 = vpop.f32.mrb[13].mxu1  ;;  %2325 = vrcp.f32 %v1134_v39  ;;  %v1106_v53 = vadd.f32 1.0, %v2306_v45  ;;  %v688_v22 = vadd.f32 %v2194_v43, %v328_v8  ;;  %v997_v27 = vmul.f32 1.442695, %v929_v6 }
 0x101   : > { %v2308_v52 = vpop.eup %2307  ;;  %2327 = vrcp.f32 %v1133_v46  ;;  %v931_v23 = vsub.f32 0.0, %v673_v7  ;;  %v1059_v30 = vmul.f32 1.442695, %v960_v13  ;;  %v962_v31 = vsub.f32 0.0, %v828_v14 }
 0x102   : > { %v2310_v57 = vpop.eup %2309  ;;  %v1105_v58 = vadd.f32 1.0, %v2308_v52  ;;  %2329 = vrcp.f32 %v1106_v53  ;;  %v2758_v3 = vpop.f32.mrb[14].mxu0  ;;  %v1057_v34 = vmul.f32 1.442695, %v959_v17  ;;  %v961_v35 = vsub.f32 0.0, %v823_v18 }
 0x103   : > { %v2312_v62 = vpop.eup %2311  ;;  %v1136_v63 = vadd.f32 1.0, %v2310_v57  ;;  %v2760_v4 = vpop.f32.mrb[14].mxu1  ;;  %v1003_v37 = vmul.f32 1.442695, %v932_v21  ;;  %v934_v38 = vsub.f32 0.0, %v688_v22  ;;  %v358_v57 = vld [vmem:[%s2721_s8 + $0x158] sm:$0xff] }
 0x104   : > { %2331 = vrcp.f32 %v1105_v58  ;;  %v1135_v5 = vadd.f32 1.0, %v2312_v62  ;;  %v2763_v9 = vpop.f32.mrb[15].mxu0  ;;  %v2765_v10 = vpop.f32.mrb[15].mxu1  ;;  %v1001_v42 = vmul.f32 1.442695, %v931_v23  ;;  %v838_v6 = vadd.f32 %v2748_v44, %v358_v57 }
 0x105   : > { %v2314_v11 = vpop.eup %2313  ;;  %2333 = vrcp.f32 %v1136_v63  ;;  %v1063_v47 = vmul.f32 1.442695, %v962_v31  ;;  %v1061_v49 = vmul.f32 1.442695, %v961_v35  ;;  %v1007_v53 = vmul.f32 1.442695, %v934_v38 }
 0x106   : > { %v2316_v15 = vpop.eup %2315  ;;  %2335 = vrcp.f32 %v1135_v5  ;;  %1408 = vperm.xlu0 %2287, %v2314_v11   ;;  %v2768_v24 = vpop.f32.mrb[16].mxu0 }
 0x107   : > { %v2318_v19 = vpop.eup %2317  ;;  %2337 = vpow2.f32 %v995_v54  ;;  %1558 = vperm.xlu1 %2288, %v2316_v15   ;;  %v2770_v25 = vpop.f32.mrb[16].mxu1  ;;  %v327_v54 = vld [vmem:[%s2721_s8 + $0x60] sm:$0xff]  ;;  %v2806_v15 = vadd.f32 %v2753_v51, %v357_v1 }
 0x108   : > { %v2320_v26 = vpop.eup %2319  ;;  %2339 = vpow2.f32 %v993_v55  ;;  %v2772_v28 = vpop.f32.mrb[17].mxu0  ;;  %v683_v0 = vadd.f32 %v2751_v50, %v327_v54 }
 0x109   : > { %v2322_v29 = vpop.eup %2321  ;;  %2341 = vpow2.f32 %v1055_v12  ;;  %v2774_v32 = vpop.f32.mrb[17].mxu1  ;;  %v963_v38 = vsub.f32 0.0, %v2806_v15 }
 0x10a   : > { %v2324_v33 = vpop.eup %2323  ;;  %2343 = vpow2.f32 %v1053_v16  ;;  %1403 = vperm.xlu0 %2287, %v2318_v19   ;;  %v2776_v39 = vpop.f32.mrb[18].mxu0  ;;  %v330_v16 = vld [vmem:[%s2721_s8 + $0x78] sm:$0xff]  ;;  %v933_v19 = vsub.f32 0.0, %v683_v0 }
 0x10b   : > { %v2326_v36 = vpop.eup %2325  ;;  %2345 = vpow2.f32 %v999_v20  ;;  %1418 = vperm.xlu1 %2288, %v2322_v29   ;;  %v2778_v40 = vpop.f32.mrb[18].mxu1  ;;  %v329_v20 = vld [vmem:[%s2721_s8 + $0x70] sm:$0xff]  ;;  %v698_v31 = vadd.f32 %v2758_v3, %v330_v16 }
 0x10c   : > { %v2328_v41 = vpop.eup %2327  ;;  %2347 = vpow2.f32 %v997_v27  ;;  %v2780_v43 = vpop.f32.mrb[19].mxu0  ;;  %v360_v27 = vld [vmem:[%s2721_s8 + $0x168] sm:$0xff] }
 0x10d   : > { %v2782_v45 = vpop.f32.mrb[19].mxu1  ;;  %v2330_v46 = vpop.eup %2329  ;;  %2349 = vpow2.f32 %v1059_v30  ;;  %v848_v3 = vadd.f32 %v2760_v4, %v360_v27  ;;  %v361_v4 = vld [vmem:[%s2721_s8 + $0x170] sm:$0xff] }
 0x10e   : > { %v2332_v48 = vpop.eup %2331  ;;  %2351 = vpow2.f32 %v1057_v34  ;;  %1553 = vperm.xlu0 %2287, %v2320_v26   ;;  %v2787_v55 = vpop.f32.mrb[20].mxu0  ;;  %v964_v26 = vsub.f32 0.0, %v838_v6 }
 0x10f   : > { %v2784_v52 = vpop.eup %2333  ;;  %2353 = vpow2.f32 %v1003_v37  ;;  %1568 = vperm.xlu1 %2288, %v2326_v36   ;;  %v2790_v58 = vpop.f32.mrb[21].mxu0  ;;  %v966_v16 = vsub.f32 0.0, %v848_v3 }
 0x110   : > { %v2336_v56 = vpop.eup %2335  ;;  %2355 = vpow2.f32 %v1001_v42  ;;  %v2792_v59 = vpop.f32.mrb[20].mxu1  ;;  %v332_v42 = vld [vmem:[%s2721_s8 + $0x88] sm:$0xff]  ;;  %v1067_v57 = vmul.f32 1.442695, %v964_v26 }
 0x111   : > { %v2338_v60 = vpop.eup %2337  ;;  %2357 = vpow2.f32 %v1063_v47  ;;  %v2794_v61 = vpop.f32.mrb[21].mxu1  ;;  %v708_v1 = vadd.f32 %v2768_v24, %v332_v42 }
 0x112   : > { %v2340_v62 = vpop.eup %2339  ;;  %v1108_v63 = vadd.f32 1.0, %v2338_v60  ;;  %2359 = vpow2.f32 %v1061_v49  ;;  %1563 = vperm.xlu0 %2287, %v2328_v41   ;;  %v2799_v7 = vpop.f32.mrb[22].mxu0  ;;  %v693_v41 = vadd.f32 %v2763_v9, %v329_v20  ;;  %v331_v49 = vld [vmem:[%s2721_s8 + $0x80] sm:$0xff]  ;;  %v362_v9 = vld [vmem:[%s2721_s8 + $0x178] sm:$0xff] }
 0x113   : > { %v2342_v2 = vpop.eup %2341  ;;  %v1107_v5 = vadd.f32 1.0, %v2340_v62  ;;  %1413 = vperm.xlu1 %2288, %v2324_v33   ;;  %2361 = vpow2.f32 %v1007_v53  ;;  %v2801_v8 = vpop.f32.mrb[22].mxu1  ;;  %v359_v33 = vld [vmem:[%s2721_s8 + $0x160] sm:$0xff]  ;;  %v858_v24 = vadd.f32 %v2770_v25, %v362_v9 }
 0x114   : > { %v2344_v11 = vpop.eup %2343  ;;  %2363 = vrcp.f32 %v1108_v63  ;;  %v1138_v12 = vadd.f32 1.0, %v2342_v2  ;;  %v2803_v13 = vpop.f32.mrb[23].mxu0  ;;  %v843_v60 = vadd.f32 %v2765_v10, %v359_v33  ;;  %v935_v10 = vsub.f32 0.0, %v693_v41 }
 0x115   : > { %v2346_v14 = vpop.eup %2345  ;;  %2365 = vrcp.f32 %v1107_v5  ;;  %v1137_v50 = vadd.f32 1.0, %v2344_v11  ;;  %v2809_v17 = vpop.f32.mrb[23].mxu1  ;;  %v703_v11 = vadd.f32 %v2772_v28, %v331_v49  ;;  %v1071_v41 = vmul.f32 1.442695, %v966_v16 }
 0x116   : > { %v2348_v44 = vpop.eup %2347  ;;  %2367 = vrcp.f32 %v1138_v12  ;;  %v1110_v18 = vadd.f32 1.0, %v2346_v14  ;;  %1423 = vperm.xlu0 %2287, %v2332_v48   ;;  %v2813_v23 = vpop.f32.mrb[24].mxu0  ;;  %v1005_v48 = vmul.f32 1.442695, %v933_v19  ;;  %v334_v12 = vld [vmem:[%s2721_s8 + $0x98] sm:$0xff]  ;;  %v965_v20 = vsub.f32 0.0, %v843_v60 }
 0x117   : > { %v2350_v21 = vpop.eup %2349  ;;  %2369 = vrcp.f32 %v1137_v50  ;;  %v1109_v22 = vadd.f32 1.0, %v2348_v44  ;;  %1428 = vperm.xlu1 %2288, %v2330_v46   ;;  %v2815_v51 = vpop.f32.mrb[24].mxu1  ;;  %v333_v44 = vld [vmem:[%s2721_s8 + $0x90] sm:$0xff]  ;;  %v1065_v19 = vmul.f32 1.442695, %v963_v38  ;;  %v968_v42 = vsub.f32 0.0, %v858_v24 }
 0x118   : > { %v2352_v29 = vpop.eup %2351  ;;  %2371 = vrcp.f32 %v1110_v18  ;;  %v1140_v30 = vadd.f32 1.0, %v2350_v21  ;;  %v2819_v34 = vpop.f32.mrb[25].mxu0  ;;  %v853_v21 = vadd.f32 %v2774_v32, %v361_v4  ;;  %v713_v32 = vadd.f32 %v2780_v43, %v333_v44  ;;  %v336_v44 = vld [vmem:[%s2721_s8 + $0xa8] sm:$0xff] }
 0x119   : > { %v2821_v35 = vpop.f32.mrb[25].mxu1  ;;  %v2354_v36 = vpop.eup %2353  ;;  %2373 = vrcp.f32 %v1109_v22  ;;  %v1139_v37 = vadd.f32 1.0, %v2352_v29  ;;  %v938_v29 = vsub.f32 0.0, %v708_v1  ;;  %v364_v1 = vld [vmem:[%s2721_s8 + $0x188] sm:$0xff] }
 0x11a   : > { %v2356_v46 = vpop.eup %2355  ;;  %2375 = vrcp.f32 %v1140_v30  ;;  %v1112_v47 = vadd.f32 1.0, %v2354_v36  ;;  %1573 = vperm.xlu0 %2287, %v2336_v56   ;;  %v2831_v62 = vpop.f32.mrb[26].mxu0  ;;  %v936_v56 = vsub.f32 0.0, %v698_v31  ;;  %v718_v30 = vadd.f32 %v2776_v39, %v334_v12 }
 0x11b   : > { %v2358_v53 = vpop.eup %2357  ;;  %2377 = vrcp.f32 %v1139_v37  ;;  %v1111_v54 = vadd.f32 1.0, %v2356_v46  ;;  %1578 = vperm.xlu1 %2288, %v2784_v52   ;;  %v2835_v2 = vpop.f32.mrb[27].mxu0  ;;  %v1009_v36 = vmul.f32 1.442695, %v935_v10  ;;  %v937_v37 = vsub.f32 0.0, %v703_v11 }
 0x11c   : > { %v2360_v63 = vpop.eup %2359  ;;  %2379 = vrcp.f32 %v1112_v47  ;;  %v1142_v0 = vadd.f32 1.0, %v2358_v53  ;;  %v2837_v5 = vpop.f32.mrb[26].mxu1  ;;  %v1011_v27 = vmul.f32 1.442695, %v936_v56  ;;  %v1069_v47 = vmul.f32 1.442695, %v965_v20 }
 0x11d   : > { %v2362_v6 = vpop.eup %2361  ;;  %2381 = vrcp.f32 %v1111_v54  ;;  %v1141_v52 = vadd.f32 1.0, %v2360_v63  ;;  %v2841_v14 = vpop.f32.mrb[27].mxu1  ;;  %v967_v3 = vsub.f32 0.0, %v853_v21  ;;  %v1015_v49 = vmul.f32 1.442695, %v938_v29  ;;  %v335_v20 = vld [vmem:[%s2721_s8 + $0xa0] sm:$0xff] }
 0x11e   : > { %v2364_v50 = vpop.eup %2363  ;;  %2383 = vrcp.f32 %v1142_v0  ;;  %v1114_v15 = vadd.f32 1.0, %v2362_v6  ;;  %v2846_v22 = vpop.f32.mrb[28].mxu0  ;;  %v940_v53 = vsub.f32 0.0, %v718_v30  ;;  %v1013_v54 = vmul.f32 1.442695, %v937_v37  ;;  %v366_v29 = vld [vmem:[%s2721_s8 + $0x198] sm:$0xff] }
 0x11f   : > { %v2366_v18 = vpop.eup %2365  ;;  %2385 = vrcp.f32 %v1141_v52  ;;  %1438 = vperm.xlu1 %2288, %v2364_v50   ;;  %v2848_v28 = vpop.f32.mrb[28].mxu1  ;;  %v939_v60 = vsub.f32 0.0, %v713_v32  ;;  %v1073_v63 = vmul.f32 1.442695, %v967_v3  ;;  %v868_v11 = vadd.f32 %v2778_v40, %v364_v1 }
 0x120   : > { %v2368_v26 = vpop.eup %2367  ;;  %2387 = vrcp.f32 %v1114_v15  ;;  %1433 = vperm.xlu0 %2287, %v2366_v18   ;;  %v2851_v25 = vpop.f32.mrb[29].mxu0  ;;  %v1019_v56 = vmul.f32 1.442695, %v940_v53  ;;  %v363_v15 = vld [vmem:[%s2721_s8 + $0x180] sm:$0xff]  ;;  %v337_v53 = vld [vmem:[%s2721_s8 + $0xb0] sm:$0xff] }
 0x121   : > { %v2853_v31 = vpop.f32.mrb[29].mxu1  ;;  %v2370_v33 = vpop.eup %2369  ;;  %2389 = vpow2.f32 %v1005_v48  ;;  %v1017_v6 = vmul.f32 1.442695, %v939_v60  ;;  %v970_v40 = vsub.f32 0.0, %v868_v11  ;;  %v340_v11 = vld [vmem:[%s2721_s8 + $0xc8] sm:$0xff] }
 0x122   : > { %v2372_v38 = vpop.eup %2371  ;;  %2391 = vpow2.f32 %v1067_v57  ;;  %v1075_v57 = vmul.f32 1.442695, %v968_v42 }
 0x123   : > { %v2374_v46 = vpop.eup %2373  ;;  %2393 = vpow2.f32 %v1065_v19  ;;  %1588 = vperm.xlu1 %2288, %v2368_v26  }
 0x124   : > { %v2376_v39 = vpop.eup %2375  ;;  %2395 = vpow2.f32 %v1011_v27  ;;  %1583 = vperm.xlu0 %2287, %v2370_v33   ;;  %v863_v27 = vadd.f32 %v2782_v45, %v363_v15  ;;  %v878_v45 = vadd.f32 %v2792_v59, %v366_v29 }
 0x125   : > { %v2378_v48 = vpop.eup %2377  ;;  %2397 = vpow2.f32 %v1009_v36  ;;  %v728_v36 = vadd.f32 %v2787_v55, %v336_v44 }
 0x126   : > { %v2380_v43 = vpop.eup %2379  ;;  %2399 = vpow2.f32 %v1071_v41  ;;  %v365_v41 = vld [vmem:[%s2721_s8 + $0x190] sm:$0xff]  ;;  %v969_v55 = vsub.f32 0.0, %v863_v27 }
 0x127   : > { %v2382_v9 = vpop.eup %2381  ;;  %2401 = vpow2.f32 %v1069_v47  ;;  %1448 = vperm.xlu1 %2288, %v2372_v38   ;;  %v723_v38 = vadd.f32 %v2790_v58, %v335_v20  ;;  %v338_v47 = vld [vmem:[%s2721_s8 + $0xb8] sm:$0xff]  ;;  %v942_v58 = vsub.f32 0.0, %v728_v36  ;;  %v873_v60 = vadd.f32 %v2794_v61, %v365_v41 }
 0x128   : > { %v2384_v0 = vpop.eup %2383  ;;  %2403 = vpow2.f32 %v1015_v49  ;;  %1443 = vperm.xlu0 %2287, %v2374_v46   ;;  %v1079_v49 = vmul.f32 1.442695, %v970_v40 }
 0x129   : > { %v2386_v4 = vpop.eup %2385  ;;  %2405 = vpow2.f32 %v1013_v54 }
 0x12a   : > { %v2857_v52 = vpop.eup %2387  ;;  %2407 = vpow2.f32 %v1075_v57 }
 0x12b   : > { %v2390_v10 = vpop.eup %2389  ;;  %2409 = vpow2.f32 %v1073_v63  ;;  %1598 = vperm.xlu1 %2288, %v2376_v39   ;;  %v738_v63 = vadd.f32 %v2799_v7, %v338_v47  ;;  %v971_v7 = vsub.f32 0.0, %v873_v60 }
 0x12c   : > { %v2392_v12 = vpop.eup %2391  ;;  %v1113_v50 = vadd.f32 1.0, %v2390_v10  ;;  %1593 = vperm.xlu0 %2287, %v2378_v48   ;;  %2411 = vpow2.f32 %v1019_v56  ;;  %v367_v56 = vld [vmem:[%s2721_s8 + $0x1a0] sm:$0xff]  ;;  %v733_v10 = vadd.f32 %v2803_v13, %v337_v53 }
 0x12d   : > { %v2394_v16 = vpop.eup %2393  ;;  %v1144_v24 = vadd.f32 1.0, %v2392_v12  ;;  %2413 = vpow2.f32 %v1017_v6  ;;  %v972_v6 = vsub.f32 0.0, %v878_v45  ;;  %v944_v13 = vsub.f32 0.0, %v738_v63  ;;  %v342_v63 = vld [vmem:[%s2721_s8 + $0xd8] sm:$0xff] }
 0x12e   : > { %v2396_v18 = vpop.eup %2395  ;;  %2415 = vrcp.f32 %v1113_v50  ;;  %v1143_v19 = vadd.f32 1.0, %v2394_v16  ;;  %v1077_v50 = vmul.f32 1.442695, %v969_v55 }
 0x12f   : > { %v2398_v21 = vpop.eup %2397  ;;  %2417 = vrcp.f32 %v1144_v24  ;;  %v1116_v26 = vadd.f32 1.0, %v2396_v18  ;;  %1458 = vperm.xlu1 %2288, %v2380_v43   ;;  %v368_v43 = vld [vmem:[%s2721_s8 + $0x1a8] sm:$0xff]  ;;  %v883_v24 = vadd.f32 %v2809_v17, %v367_v56  ;;  %v1023_v18 = vmul.f32 1.442695, %v942_v58 }
 0x130   : > { %v2400_v30 = vpop.eup %2399  ;;  %2419 = vrcp.f32 %v1143_v19  ;;  %v1115_v33 = vadd.f32 1.0, %v2398_v21  ;;  %1453 = vperm.xlu0 %2287, %v2382_v9   ;;  %v941_v9 = vsub.f32 0.0, %v723_v38  ;;  %v888_v61 = vadd.f32 %v2801_v8, %v368_v43  ;;  %v370_v38 = vld [vmem:[%s2721_s8 + $0x1b8] sm:$0xff] }
 0x131   : > { %v2402_v37 = vpop.eup %2401  ;;  %2421 = vrcp.f32 %v1116_v26  ;;  %v1146_v32 = vadd.f32 1.0, %v2400_v30  ;;  %v748_v19 = vadd.f32 %v2813_v23, %v340_v11  ;;  %v1083_v8 = vmul.f32 1.442695, %v972_v6  ;;  %v339_v30 = vld [vmem:[%s2721_s8 + $0xc0] sm:$0xff] }
 0x132   : > { %v2404_v42 = vpop.eup %2403  ;;  %2423 = vrcp.f32 %v1115_v33  ;;  %v1145_v46 = vadd.f32 1.0, %v2402_v37  ;;  %v1021_v21 = vmul.f32 1.442695, %v941_v9  ;;  %v974_v40 = vsub.f32 0.0, %v888_v61 }
 0x133   : > { %v2406_v3 = vpop.eup %2405  ;;  %2425 = vrcp.f32 %v1146_v32  ;;  %v1118_v39 = vadd.f32 1.0, %v2404_v42  ;;  %1608 = vperm.xlu1 %2288, %v2384_v0   ;;  %v1081_v17 = vmul.f32 1.442695, %v971_v7  ;;  %v973_v29 = vsub.f32 0.0, %v883_v24 }
 0x134   : > { %v2408_v48 = vpop.eup %2407  ;;  %2427 = vrcp.f32 %v1145_v46  ;;  %v1117_v54 = vadd.f32 1.0, %v2406_v3  ;;  %1603 = vperm.xlu0 %2287, %v2386_v4   ;;  %v1027_v36 = vmul.f32 1.442695, %v944_v13  ;;  %v946_v23 = vsub.f32 0.0, %v748_v19 }
 0x135   : > { %v2410_v57 = vpop.eup %2409  ;;  %2429 = vrcp.f32 %v1118_v39  ;;  %v1148_v59 = vadd.f32 1.0, %v2408_v48  ;;  %v1087_v42 = vmul.f32 1.442695, %v974_v40  ;;  %v743_v46 = vadd.f32 %v2819_v34, %v339_v30 }
 0x136   : > { %v2412_v1 = vpop.eup %2411  ;;  %2431 = vrcp.f32 %v1117_v54  ;;  %v1147_v0 = vadd.f32 1.0, %v2410_v57  ;;  %v1085_v47 = vmul.f32 1.442695, %v973_v29  ;;  %v1031_v39 = vmul.f32 1.442695, %v946_v23  ;;  %v369_v57 = vld [vmem:[%s2721_s8 + $0x1b0] sm:$0xff] }
 0x137   : > { %v2414_v12 = vpop.eup %2413  ;;  %2433 = vrcp.f32 %v1148_v59  ;;  %v1120_v4 = vadd.f32 1.0, %v2412_v1  ;;  %1468 = vperm.xlu1 %2288, %v2857_v52   ;;  %v943_v52 = vsub.f32 0.0, %v733_v10  ;;  %v945_v48 = vsub.f32 0.0, %v743_v46 }
 0x138   : > { %v2416_v15 = vpop.eup %2415  ;;  %2435 = vrcp.f32 %v1147_v0  ;;  %v1119_v16 = vadd.f32 1.0, %v2414_v12  ;;  %v341_v0 = vld [vmem:[%s2721_s8 + $0xd0] sm:$0xff]  ;;  %v893_v12 = vadd.f32 %v2821_v35, %v369_v57 }
 0x139   : > { %v2418_v44 = vpop.eup %2417  ;;  %2437 = vrcp.f32 %v1120_v4  ;;  %1463 = vperm.xlu0 %2287, %v2416_v15   ;;  %v1025_v32 = vmul.f32 1.442695, %v943_v52  ;;  %v1029_v9 = vmul.f32 1.442695, %v945_v48  ;;  %v372_v4 = vld [vmem:[%s2721_s8 + $0x1c8] sm:$0xff]  ;;  %v758_v15 = vadd.f32 %v2831_v62, %v342_v63 }
 0x13a   : > { %v2420_v20 = vpop.eup %2419  ;;  %2439 = vrcp.f32 %v1119_v16  ;;  %v371_v16 = vld [vmem:[%s2721_s8 + $0x1c0] sm:$0xff]  ;;  %v908_v35 = vadd.f32 %v2837_v5, %v372_v4 }
 0x13b   : > { %v2422_v26 = vpop.eup %2421  ;;  %2441 = vpow2.f32 %v1079_v49  ;;  %1618 = vperm.xlu1 %2288, %v2418_v44   ;;  %v898_v49 = vadd.f32 %v2815_v51, %v370_v38  ;;  %v753_v44 = vadd.f32 %v2835_v2, %v341_v0  ;;  %v903_v62 = vadd.f32 %v2841_v14, %v371_v16 }
 0x13c   : > { %v2424_v27 = vpop.eup %2423  ;;  %2443 = vpow2.f32 %v1077_v50  ;;  %v948_v2 = vsub.f32 0.0, %v758_v15  ;;  %v978_v23 = vsub.f32 0.0, %v908_v35 }
 0x13d   : > { %v2426_v33 = vpop.eup %2425  ;;  %2445 = vpow2.f32 %v1023_v18  ;;  %1613 = vperm.xlu0 %2287, %v2420_v20   ;;  %v976_v58 = vsub.f32 0.0, %v898_v49  ;;  %v344_v18 = vld [vmem:[%s2721_s8 + $0xe8] sm:$0xff]  ;;  %v343_v20 = vld [vmem:[%s2721_s8 + $0xe0] sm:$0xff]  ;;  %v947_v5 = vsub.f32 0.0, %v753_v44 }
 0x13e   : > { %v2428_v37 = vpop.eup %2427  ;;  %2447 = vpow2.f32 %v1021_v21 }
 0x13f   : > { %v2430_v41 = vpop.eup %2429  ;;  %2449 = vpow2.f32 %v1083_v8  ;;  %1478 = vperm.xlu1 %2288, %v2422_v26   ;;  %v1091_v11 = vmul.f32 1.442695, %v976_v58  ;;  %v975_v26 = vsub.f32 0.0, %v893_v12 }
 0x140   : > { %v2432_v45 = vpop.eup %2431  ;;  %2451 = vpow2.f32 %v1081_v17  ;;  %v374_v17 = vld [vmem:[%s2721_s8 + $0x1d8] sm:$0xff] }
 0x141   : > { %v2434_v3 = vpop.eup %2433  ;;  %2453 = vpow2.f32 %v1027_v36  ;;  %1473 = vperm.xlu0 %2287, %v2424_v27   ;;  %v768_v27 = vadd.f32 %v2846_v22, %v344_v18  ;;  %v1089_v14 = vmul.f32 1.442695, %v975_v26  ;;  %v918_v38 = vadd.f32 %v2848_v28, %v374_v17 }
 0x142   : > { %v2436_v55 = vpop.eup %2435  ;;  %2455 = vpow2.f32 %v1025_v32  ;;  %v977_v32 = vsub.f32 0.0, %v903_v62 }
 0x143   : > { %v2438_v53 = vpop.eup %2437  ;;  %2457 = vpow2.f32 %v1087_v42  ;;  %1628 = vperm.xlu1 %2288, %v2426_v33   ;;  %v763_v33 = vadd.f32 %v2851_v25, %v343_v20  ;;  %v950_v42 = vsub.f32 0.0, %v768_v27 }
 0x144   : > { %v2885_v54 = vpop.eup %2439  ;;  %2459 = vpow2.f32 %v1085_v47 }
 0x145   : > { %v2442_v34 = vpop.eup %2441  ;;  %1623 = vperm.xlu0 %2287, %v2428_v37   ;;  %2461 = vpow2.f32 %v1031_v39  ;;  %v373_v37 = vld [vmem:[%s2721_s8 + $0x1d0] sm:$0xff]  ;;  %v949_v25 = vsub.f32 0.0, %v763_v33  ;;  %v1095_v39 = vmul.f32 1.442695, %v978_v23  ;;  %v1039_v48 = vmul.f32 1.442695, %v950_v42 }
 0x146   : > { %v2444_v60 = vpop.eup %2443  ;;  %v1150_v43 = vadd.f32 1.0, %v2442_v34  ;;  %v913_v47 = vadd.f32 %v2853_v31, %v373_v37  ;;  %v1283_v33 = vld [vmem:[%s2910_s12 + $0x10] sm:$0xff]  ;;  %v1344_v37 = vld [vmem:[%s2910_s12 + $0x1f8] sm:$0xff] }
 0x147   : > { %v2446_v51 = vpop.eup %2445  ;;  %v1149_v59 = vadd.f32 1.0, %v2444_v60  ;;  %1488 = vperm.xlu1 %2288, %v2430_v41   ;;  %v1035_v41 = vmul.f32 1.442695, %v948_v2  ;;  %v1037_v34 = vmul.f32 1.442695, %v949_v25  ;;  %v1343_v23 = vld [vmem:[%s2910_s12 + $0x1f0] sm:$0xff] }
 0x148   : > { %v2448_v56 = vpop.eup %2447  ;;  %2463 = vrcp.f32 %v1150_v43  ;;  %v1122_v1 = vadd.f32 1.0, %v2446_v51  ;;  %v979_v58 = vsub.f32 0.0, %v913_v47  ;;  %v1287_v25 = vld [vmem:[%s2910_s12 + $0x30] sm:$0xff]  ;;  %v1288_v47 = vld [vmem:[%s2910_s12 + $0x38] sm:$0xff] }
 0x149   : > { %v2450_v6 = vpop.eup %2449  ;;  %2465 = vrcp.f32 %v1149_v59  ;;  %v1121_v10 = vadd.f32 1.0, %v2448_v56  ;;  %1483 = vperm.xlu0 %2287, %v2432_v45   ;;  %v1033_v45 = vmul.f32 1.442695, %v947_v5 }
 0x14a   : > { %v2452_v50 = vpop.eup %2451  ;;  %2467 = vrcp.f32 %v1122_v1  ;;  %v1152_v61 = vadd.f32 1.0, %v2450_v6  ;;  %v1097_v63 = vmul.f32 1.442695, %v979_v58  ;;  %v1348_v58 = vld [vmem:[%s2910_s12 + $0x218] sm:$0xff] }
 0x14b   : > { %v2454_v7 = vpop.eup %2453  ;;  %v1151_v24 = vadd.f32 1.0, %v2452_v50  ;;  %2469 = vpow2.f32 %v1029_v9  ;;  %1638 = vperm.xlu1 %2288, %v2434_v3  }
 0x14c   : > { %v2456_v13 = vpop.eup %2455  ;;  %2471 = vrcp.f32 %v1121_v10  ;;  %v1124_v19 = vadd.f32 1.0, %v2454_v7 }
 0x14d   : > { %v2458_v21 = vpop.eup %2457  ;;  %v1123_v52 = vadd.f32 1.0, %v2456_v13  ;;  %2473 = vpow2.f32 %v1091_v11  ;;  %1633 = vperm.xlu0 %2287, %v2436_v55   ;;  %v1093_v55 = vmul.f32 1.442695, %v977_v32 }
 0x14e   : > { %v2460_v8 = vpop.eup %2459  ;;  %2475 = vrcp.f32 %v1152_v61  ;;  %v1154_v40 = vadd.f32 1.0, %v2458_v21 }
 0x14f   : > { %v2462_v29 = vpop.eup %2461  ;;  %2477 = vrcp.f32 %v1151_v24  ;;  %v1153_v30 = vadd.f32 1.0, %v2460_v8  ;;  %1498 = vperm.xlu1 %2288, %v2438_v53   ;;  %v980_v53 = vsub.f32 0.0, %v918_v38 }
 0x150   : > { %2479 = vrcp.f32 %v1124_v19  ;;  %v1126_v36 = vadd.f32 1.0, %v2462_v29 }
 0x151   : > { %2481 = vrcp.f32 %v1123_v52  ;;  %1493 = vperm.xlu0 %2287, %v2885_v54   ;;  %v1099_v57 = vmul.f32 1.442695, %v980_v53 }
 0x152   : > { %v2464_v22 = vpop.eup %2463  ;;  %2483 = vrcp.f32 %v1154_v40 }
 0x153   : > { %v2466_v46 = vpop.eup %2465  ;;  %2485 = vrcp.f32 %v1153_v30  ;;  %1648 = vperm.xlu1 %2288, %v2464_v22  }
 0x154   : > { %v2468_v3 = vpop.eup %2467  ;;  %2487 = vrcp.f32 %v1126_v36  ;;  %v1284_v36 = vld [vmem:[%s2910_s12 + $0x18] sm:$0xff] }
 0x155   : > { %v2470_v49 = vpop.eup %2469  ;;  %2489 = vpow2.f32 %v1089_v14  ;;  %1643 = vperm.xlu0 %2287, %v2466_v46   ;;  %v1281_v46 = vld [vmem:[%s2910_s12] sm:$0xff] }
 0x156   : > { %v2472_v28 = vpop.eup %2471  ;;  %2491 = vpow2.f32 %v1035_v41  ;;  %v1125_v43 = vadd.f32 1.0, %v2470_v49 }
 0x157   : > { %v2474_v54 = vpop.eup %2473  ;;  %2493 = vpow2.f32 %v1033_v45  ;;  %1508 = vperm.xlu1 %2288, %v2468_v3   ;;  %v1282_v45 = vld [vmem:[%s2910_s12 + $0x8] sm:$0xff] }
 0x158   : > { %v2476_v60 = vpop.eup %2475  ;;  %2495 = vpow2.f32 %v1095_v39  ;;  %v1156_v59 = vadd.f32 1.0, %v2474_v54  ;;  %v1342_v54 = vld [vmem:[%s2910_s12 + $0x1e8] sm:$0xff] }
 0x159   : > { %v2478_v31 = vpop.eup %2477  ;;  %2497 = vpow2.f32 %v1093_v55  ;;  %1503 = vperm.xlu0 %2287, %v2472_v28  }
 0x15a   : > { %v2480_v51 = vpop.eup %2479  ;;  %2499 = vpow2.f32 %v1039_v48  ;;  %v1341_v48 = vld [vmem:[%s2910_s12 + $0x1e0] sm:$0xff] }
 0x15b   : > { %v2482_v9 = vpop.eup %2481  ;;  %2501 = vpow2.f32 %v1037_v34  ;;  %1658 = vperm.xlu1 %2288, %v2476_v60   ;;  %v1347_v34 = vld [vmem:[%s2910_s12 + $0x210] sm:$0xff] }
 0x15c   : > { %v2484_v56 = vpop.eup %2483  ;;  %2503 = vrcp.f32 %v1125_v43 }
 0x15d   : > { %v2486_v1 = vpop.eup %2485  ;;  %2505 = vpow2.f32 %v1099_v57  ;;  %1653 = vperm.xlu0 %2287, %v2478_v31  }
 0x15e   : > { %v2488_v0 = vpop.eup %2487  ;;  %2507 = vrcp.f32 %v1156_v59 }
 0x15f   : > { %v2490_v6 = vpop.eup %2489  ;;  %2509 = vpow2.f32 %v1097_v63  ;;  %1518 = vperm.xlu1 %2288, %v2480_v51   ;;  %v1346_v63 = vld [vmem:[%s2910_s12 + $0x208] sm:$0xff] }
 0x160   : > { %v2492_v10 = vpop.eup %2491  ;;  %v1155_v11 = vadd.f32 1.0, %v2490_v6 }
 0x161   : > { %v2494_v12 = vpop.eup %2493  ;;  %v1128_v4 = vadd.f32 1.0, %v2492_v10  ;;  %1513 = vperm.xlu0 %2287, %v2482_v9   ;;  %v1345_v9 = vld [vmem:[%s2910_s12 + $0x200] sm:$0xff] }
 0x162   : > { %v2496_v50 = vpop.eup %2495  ;;  %2511 = vrcp.f32 %v1155_v11  ;;  %v1127_v61 = vadd.f32 1.0, %v2494_v12 }
 0x163   : > { %v2498_v15 = vpop.eup %2497  ;;  %2513 = vrcp.f32 %v1128_v4  ;;  %v1158_v16 = vadd.f32 1.0, %v2496_v50  ;;  %1668 = vperm.xlu1 %2288, %v2484_v56   ;;  %v1285_v56 = vld [vmem:[%s2910_s12 + $0x20] sm:$0xff] }
 0x164   : > { %v2500_v7 = vpop.eup %2499  ;;  %2515 = vrcp.f32 %v1127_v61  ;;  %v1157_v24 = vadd.f32 1.0, %v2498_v15  ;;  %v1289_v50 = vld [vmem:[%s2910_s12 + $0x40] sm:$0xff]  ;;  %v1290_v61 = vld [vmem:[%s2910_s12 + $0x48] sm:$0xff]  ;;  %v1291_v15 = vld [vmem:[%s2910_s12 + $0x50] sm:$0xff] }
 0x165   : > { %v2502_v44 = vpop.eup %2501  ;;  %1663 = vperm.xlu0 %2287, %v2486_v1   ;;  %2517 = vrcp.f32 %v1158_v16  ;;  %v1130_v13 = vadd.f32 1.0, %v2500_v7  ;;  %v1286_v1 = vld [vmem:[%s2910_s12 + $0x28] sm:$0xff]  ;;  %v1292_v16 = vld [vmem:[%s2910_s12 + $0x58] sm:$0xff] }
 0x166   : > { %v2504_v18 = vpop.eup %2503  ;;  %2519 = vrcp.f32 %v1157_v24  ;;  %v1129_v20 = vadd.f32 1.0, %v2502_v44 }
 0x167   : > { %v2506_v19 = vpop.eup %2505  ;;  %1528 = vperm.xlu1 %2288, %v2488_v0   ;;  %2521 = vrcp.f32 %v1130_v13 }
 0x168   : > { %v2508_v35 = vpop.eup %2507  ;;  %v1160_v52 = vadd.f32 1.0, %v2506_v19  ;;  %2523 = vrcp.f32 %v1129_v20  ;;  %v1350_v20 = vld [vmem:[%s2910_s12 + $0x228] sm:$0xff] }
 0x169   : > { %v2510_v21 = vpop.eup %2509  ;;  %1523 = vperm.xlu0 %2287, %v2504_v18  }
 0x16a   : > { %v1159_v62 = vadd.f32 1.0, %v2510_v21  ;;  %2525 = vrcp.f32 %v1160_v52  ;;  %v1351_v21 = vld [vmem:[%s2910_s12 + $0x230] sm:$0xff]  ;;  %v1352_v52 = vld [vmem:[%s2910_s12 + $0x238] sm:$0xff] }
 0x16b   : > { %1678 = vperm.xlu1 %2288, %v2508_v35   ;;  %v1349_v35 = vld [vmem:[%s2910_s12 + $0x220] sm:$0xff] }
 0x16c   : > { %v2512_v26 = vpop.eup %2511  ;;  %2527 = vrcp.f32 %v1159_v62 }
 0x16d   : > { %v2514_v8 = vpop.eup %2513  ;;  %1673 = vperm.xlu0 %2287, %v2512_v26  }
 0x16e   : > { %v2516_v40 = vpop.eup %2515 }
 0x16f   : > { %1538 = vperm.xlu1 %2288, %v2514_v8   ;;  %v2518_v2 = vpop.eup %2517 }
 0x170   : > { %v2520_v27 = vpop.eup %2519 }
 0x171   : > { %1533 = vperm.xlu0 %2287, %v2516_v40   ;;  %v2522_v17 = vpop.eup %2521 }
 0x172   : > { %v2524_v29 = vpop.eup %2523 }
 0x173   : > { %1688 = vperm.xlu1 %2288, %v2518_v2  }
 0x174   : > { %v2526_v30 = vpop.eup %2525 }
 0x175   : > { %1683 = vperm.xlu0 %2287, %v2520_v27  }
 0x176   : > { %v2528_v5 = vpop.eup %2527 }
 0x177   : > { %1548 = vperm.xlu1 %2288, %v2522_v17   ;;  %v1295_v17 = vld [vmem:[%s2910_s12 + $0x70] sm:$0xff] }
 0x179   : > { %1543 = vperm.xlu0 %2287, %v2524_v29   ;;  %v1296_v29 = vld [vmem:[%s2910_s12 + $0x78] sm:$0xff] }
 0x17b   : > { %1698 = vperm.xlu1 %2288, %v2526_v30   ;;  %v1293_v30 = vld [vmem:[%s2910_s12 + $0x60] sm:$0xff] }
 0x17d   : > { %1693 = vperm.xlu0 %2287, %v2528_v5   ;;  %v1294_v5 = vld [vmem:[%s2910_s12 + $0x68] sm:$0xff] }
 0x185   : > { %v1409_v14 = vpop.permute.xlu0 %1408 }
 0x186   : > { %v1559_v32 = vpop.permute.xlu1 %1558  ;;  %v1703_v38 = vmul.f32 %v1409_v14, %v1283_v33  ;;  %v1704_v22 = vmul.f32 %v1409_v14, %v1284_v36 }
 0x187   : > { %v1763_v41 = vmul.f32 %v1559_v32, %v1343_v23  ;;  %v1764_v42 = vmul.f32 %v1559_v32, %v1344_v37 }
 0x188   : > { %1824 = vst [vmem:[%s2919_s16 + $0x10] sm:$0xff] %v1703_v38  ;;  %1825 = vst.msk [vmem:[%s2919_s16 + $0x18] sm:$0xff] %vm1822_vm1, %v1704_v22  ;;  %v1355_v38 = vld [vmem:[%s2910_s12 + $0x250] sm:$0xff]  ;;  %v1356_v22 = vld [vmem:[%s2910_s12 + $0x258] sm:$0xff] }
 0x189   : > { %1884 = vst [vmem:[%s2919_s16 + $0x1f0] sm:$0xff] %v1763_v41  ;;  %1885 = vst.msk [vmem:[%s2919_s16 + $0x1f8] sm:$0xff] %vm1822_vm1, %v1764_v42  ;;  %v1404_v3 = vpop.permute.xlu0 %1403  ;;  %v1353_v41 = vld [vmem:[%s2910_s12 + $0x240] sm:$0xff]  ;;  %v1354_v42 = vld [vmem:[%s2910_s12 + $0x248] sm:$0xff] }
 0x18a   : > { %v1419_v39 = vpop.permute.xlu1 %1418  ;;  %v1701_v49 = vmul.f32 %v1404_v3, %v1281_v46  ;;  %v1702_v55 = vmul.f32 %v1404_v3, %v1282_v45 }
 0x18b   : > { %v1707_v53 = vmul.f32 %v1419_v39, %v1287_v25  ;;  %v1708_v28 = vmul.f32 %v1419_v39, %v1288_v47 }
 0x18c   : > { %1821 = vst [vmem:[%s2919_s16] sm:$0xff] %v1701_v49  ;;  %1823 = vst.msk [vmem:[%s2919_s16 + $0x8] sm:$0xff] %vm1822_vm1, %v1702_v55  ;;  %v1299_v49 = vld [vmem:[%s2910_s12 + $0x90] sm:$0xff]  ;;  %v1300_v55 = vld [vmem:[%s2910_s12 + $0x98] sm:$0xff] }
 0x18d   : > { %1828 = vst [vmem:[%s2919_s16 + $0x30] sm:$0xff] %v1707_v53  ;;  %1829 = vst.msk [vmem:[%s2919_s16 + $0x38] sm:$0xff] %vm1822_vm1, %v1708_v28  ;;  %v1554_v60 = vpop.permute.xlu0 %1553  ;;  %v1297_v53 = vld [vmem:[%s2910_s12 + $0x80] sm:$0xff]  ;;  %v1298_v28 = vld [vmem:[%s2910_s12 + $0x88] sm:$0xff] }
 0x18e   : > { %v1569_v43 = vpop.permute.xlu1 %1568  ;;  %v1761_v31 = vmul.f32 %v1554_v60, %v1341_v48  ;;  %v1762_v57 = vmul.f32 %v1554_v60, %v1342_v54 }
 0x18f   : > { %v1767_v51 = vmul.f32 %v1569_v43, %v1347_v34  ;;  %v1768_v59 = vmul.f32 %v1569_v43, %v1348_v58 }
 0x190   : > { %1882 = vst [vmem:[%s2919_s16 + $0x1e0] sm:$0xff] %v1761_v31  ;;  %1883 = vst.msk [vmem:[%s2919_s16 + $0x1e8] sm:$0xff] %vm1822_vm1, %v1762_v57  ;;  %v1359_v31 = vld [vmem:[%s2910_s12 + $0x270] sm:$0xff]  ;;  %v1360_v57 = vld [vmem:[%s2910_s12 + $0x278] sm:$0xff] }
 0x191   : > { %1888 = vst [vmem:[%s2919_s16 + $0x210] sm:$0xff] %v1767_v51  ;;  %1889 = vst.msk [vmem:[%s2919_s16 + $0x218] sm:$0xff] %vm1822_vm1, %v1768_v59  ;;  %v1564_v0 = vpop.permute.xlu0 %1563  ;;  %v1357_v51 = vld [vmem:[%s2910_s12 + $0x260] sm:$0xff]  ;;  %v1358_v59 = vld [vmem:[%s2910_s12 + $0x268] sm:$0xff] }
 0x192   : > { %v1414_v6 = vpop.permute.xlu1 %1413  ;;  %v1765_v10 = vmul.f32 %v1564_v0, %v1345_v9  ;;  %v1766_v11 = vmul.f32 %v1564_v0, %v1346_v63 }
 0x193   : > { %v1705_v12 = vmul.f32 %v1414_v6, %v1285_v56  ;;  %v1706_v4 = vmul.f32 %v1414_v6, %v1286_v1 }
 0x194   : > { %1886 = vst [vmem:[%s2919_s16 + $0x200] sm:$0xff] %v1765_v10  ;;  %1887 = vst.msk [vmem:[%s2919_s16 + $0x208] sm:$0xff] %vm1822_vm1, %v1766_v11  ;;  %v1303_v10 = vld [vmem:[%s2910_s12 + $0xb0] sm:$0xff]  ;;  %v1304_v11 = vld [vmem:[%s2910_s12 + $0xb8] sm:$0xff] }
 0x195   : > { %1826 = vst [vmem:[%s2919_s16 + $0x20] sm:$0xff] %v1705_v12  ;;  %1827 = vst.msk [vmem:[%s2919_s16 + $0x28] sm:$0xff] %vm1822_vm1, %v1706_v4  ;;  %v1424_v7 = vpop.permute.xlu0 %1423  ;;  %v1301_v12 = vld [vmem:[%s2910_s12 + $0xa0] sm:$0xff]  ;;  %v1302_v4 = vld [vmem:[%s2910_s12 + $0xa8] sm:$0xff] }
 0x196   : > { %v1429_v24 = vpop.permute.xlu1 %1428  ;;  %v1709_v44 = vmul.f32 %v1424_v7, %v1289_v50  ;;  %v1710_v18 = vmul.f32 %v1424_v7, %v1290_v61 }
 0x197   : > { %v1711_v13 = vmul.f32 %v1429_v24, %v1291_v15  ;;  %v1712_v19 = vmul.f32 %v1429_v24, %v1292_v16 }
 0x198   : > { %1830 = vst [vmem:[%s2919_s16 + $0x40] sm:$0xff] %v1709_v44  ;;  %1831 = vst.msk [vmem:[%s2919_s16 + $0x48] sm:$0xff] %vm1822_vm1, %v1710_v18  ;;  %v1363_v44 = vld [vmem:[%s2910_s12 + $0x290] sm:$0xff]  ;;  %v1364_v18 = vld [vmem:[%s2910_s12 + $0x298] sm:$0xff] }
 0x199   : > { %1832 = vst [vmem:[%s2919_s16 + $0x50] sm:$0xff] %v1711_v13  ;;  %1833 = vst.msk [vmem:[%s2919_s16 + $0x58] sm:$0xff] %vm1822_vm1, %v1712_v19  ;;  %v1574_v26 = vpop.permute.xlu0 %1573  ;;  %v1361_v13 = vld [vmem:[%s2910_s12 + $0x280] sm:$0xff]  ;;  %v1362_v19 = vld [vmem:[%s2910_s12 + $0x288] sm:$0xff] }
 0x19a   : > { %v1579_v62 = vpop.permute.xlu1 %1578  ;;  %v1769_v8 = vmul.f32 %v1574_v26, %v1349_v35  ;;  %v1770_v40 = vmul.f32 %v1574_v26, %v1350_v20 }
 0x19b   : > { %v1771_v2 = vmul.f32 %v1579_v62, %v1351_v21  ;;  %v1772_v27 = vmul.f32 %v1579_v62, %v1352_v52 }
 0x19c   : > { %1890 = vst [vmem:[%s2919_s16 + $0x220] sm:$0xff] %v1769_v8  ;;  %1891 = vst.msk [vmem:[%s2919_s16 + $0x228] sm:$0xff] %vm1822_vm1, %v1770_v40  ;;  %v1307_v8 = vld [vmem:[%s2910_s12 + $0xd0] sm:$0xff]  ;;  %v1308_v40 = vld [vmem:[%s2910_s12 + $0xd8] sm:$0xff] }
 0x19d   : > { %1892 = vst [vmem:[%s2919_s16 + $0x230] sm:$0xff] %v1771_v2  ;;  %1893 = vst.msk [vmem:[%s2919_s16 + $0x238] sm:$0xff] %vm1822_vm1, %v1772_v27  ;;  %v1305_v27 = vld [vmem:[%s2910_s12 + $0xc0] sm:$0xff] }
 0x19e   : > { %v1439_v33 = vpop.permute.xlu1 %1438 }
 0x19f   : > { %v1715_v36 = vmul.f32 %v1439_v33, %v1295_v17  ;;  %v1716_v23 = vmul.f32 %v1439_v33, %v1296_v29  ;;  %v1434_v37 = vpop.permute.xlu0 %1433  ;;  %v1306_v17 = vld [vmem:[%s2910_s12 + $0xc8] sm:$0xff]  ;;  %v1367_v33 = vld [vmem:[%s2910_s12 + $0x2b0] sm:$0xff] }
 0x1a0   : > { %v1713_v14 = vmul.f32 %v1434_v37, %v1293_v30  ;;  %v1714_v32 = vmul.f32 %v1434_v37, %v1294_v5 }
 0x1a1   : > { %1836 = vst [vmem:[%s2919_s16 + $0x70] sm:$0xff] %v1715_v36  ;;  %1837 = vst.msk [vmem:[%s2919_s16 + $0x78] sm:$0xff] %vm1822_vm1, %v1716_v23  ;;  %v1368_v36 = vld [vmem:[%s2910_s12 + $0x2b8] sm:$0xff] }
 0x1a2   : > { %1834 = vst [vmem:[%s2919_s16 + $0x60] sm:$0xff] %v1713_v14  ;;  %1835 = vst.msk [vmem:[%s2919_s16 + $0x68] sm:$0xff] %vm1822_vm1, %v1714_v32  ;;  %v1589_v46 = vpop.permute.xlu1 %1588  ;;  %v1365_v32 = vld [vmem:[%s2910_s12 + $0x2a0] sm:$0xff] }
 0x1a3   : > { %v1775_v45 = vmul.f32 %v1589_v46, %v1355_v38  ;;  %v1776_v25 = vmul.f32 %v1589_v46, %v1356_v22  ;;  %v1584_v47 = vpop.permute.xlu0 %1583  ;;  %v1366_v38 = vld [vmem:[%s2910_s12 + $0x2a8] sm:$0xff]  ;;  %v1311_v46 = vld [vmem:[%s2910_s12 + $0xf0] sm:$0xff] }
 0x1a4   : > { %v1773_v3 = vmul.f32 %v1584_v47, %v1353_v41  ;;  %v1774_v39 = vmul.f32 %v1584_v47, %v1354_v42 }
 0x1a5   : > { %1896 = vst [vmem:[%s2919_s16 + $0x250] sm:$0xff] %v1775_v45  ;;  %1897 = vst.msk [vmem:[%s2919_s16 + $0x258] sm:$0xff] %vm1822_vm1, %v1776_v25  ;;  %v1312_v45 = vld [vmem:[%s2910_s12 + $0xf8] sm:$0xff] }
 0x1a6   : > { %1894 = vst [vmem:[%s2919_s16 + $0x240] sm:$0xff] %v1773_v3  ;;  %1895 = vst.msk [vmem:[%s2919_s16 + $0x248] sm:$0xff] %vm1822_vm1, %v1774_v39  ;;  %v1449_v48 = vpop.permute.xlu1 %1448  ;;  %v1309_v39 = vld [vmem:[%s2910_s12 + $0xe0] sm:$0xff] }
 0x1a7   : > { %v1719_v54 = vmul.f32 %v1449_v48, %v1299_v49  ;;  %v1720_v34 = vmul.f32 %v1449_v48, %v1300_v55  ;;  %v1444_v58 = vpop.permute.xlu0 %1443  ;;  %v1310_v49 = vld [vmem:[%s2910_s12 + $0xe8] sm:$0xff]  ;;  %v1371_v48 = vld [vmem:[%s2910_s12 + $0x2d0] sm:$0xff] }
 0x1a8   : > { %v1717_v60 = vmul.f32 %v1444_v58, %v1297_v53  ;;  %v1718_v43 = vmul.f32 %v1444_v58, %v1298_v28 }
 0x1a9   : > { %1840 = vst [vmem:[%s2919_s16 + $0x90] sm:$0xff] %v1719_v54  ;;  %1841 = vst.msk [vmem:[%s2919_s16 + $0x98] sm:$0xff] %vm1822_vm1, %v1720_v34  ;;  %v1372_v54 = vld [vmem:[%s2910_s12 + $0x2d8] sm:$0xff] }
 0x1aa   : > { %1838 = vst [vmem:[%s2919_s16 + $0x80] sm:$0xff] %v1717_v60  ;;  %1839 = vst.msk [vmem:[%s2919_s16 + $0x88] sm:$0xff] %vm1822_vm1, %v1718_v43  ;;  %v1599_v9 = vpop.permute.xlu1 %1598  ;;  %v1369_v43 = vld [vmem:[%s2910_s12 + $0x2c0] sm:$0xff] }
 0x1ab   : > { %v1779_v63 = vmul.f32 %v1599_v9, %v1359_v31  ;;  %v1780_v56 = vmul.f32 %v1599_v9, %v1360_v57  ;;  %v1594_v1 = vpop.permute.xlu0 %1593  ;;  %v1370_v31 = vld [vmem:[%s2910_s12 + $0x2c8] sm:$0xff]  ;;  %v1315_v9 = vld [vmem:[%s2910_s12 + $0x110] sm:$0xff] }
 0x1ac   : > { %v1777_v0 = vmul.f32 %v1594_v1, %v1357_v51  ;;  %v1778_v6 = vmul.f32 %v1594_v1, %v1358_v59 }
 0x1ad   : > { %1900 = vst [vmem:[%s2919_s16 + $0x270] sm:$0xff] %v1779_v63  ;;  %1901 = vst.msk [vmem:[%s2919_s16 + $0x278] sm:$0xff] %vm1822_vm1, %v1780_v56  ;;  %v1316_v63 = vld [vmem:[%s2910_s12 + $0x118] sm:$0xff] }
 0x1ae   : > { %1898 = vst [vmem:[%s2919_s16 + $0x260] sm:$0xff] %v1777_v0  ;;  %1899 = vst.msk [vmem:[%s2919_s16 + $0x268] sm:$0xff] %vm1822_vm1, %v1778_v6  ;;  %v1459_v50 = vpop.permute.xlu1 %1458  ;;  %v1313_v6 = vld [vmem:[%s2910_s12 + $0x100] sm:$0xff] }
 0x1af   : > { %v1723_v61 = vmul.f32 %v1459_v50, %v1303_v10  ;;  %v1724_v15 = vmul.f32 %v1459_v50, %v1304_v11  ;;  %v1454_v16 = vpop.permute.xlu0 %1453  ;;  %v1314_v10 = vld [vmem:[%s2910_s12 + $0x108] sm:$0xff]  ;;  %v1375_v50 = vld [vmem:[%s2910_s12 + $0x2f0] sm:$0xff] }
 0x1b0   : > { %v1721_v7 = vmul.f32 %v1454_v16, %v1301_v12  ;;  %v1722_v24 = vmul.f32 %v1454_v16, %v1302_v4 }
 0x1b1   : > { %1844 = vst [vmem:[%s2919_s16 + $0xb0] sm:$0xff] %v1723_v61  ;;  %1845 = vst.msk [vmem:[%s2919_s16 + $0xb8] sm:$0xff] %vm1822_vm1, %v1724_v15  ;;  %v1376_v61 = vld [vmem:[%s2910_s12 + $0x2f8] sm:$0xff] }
 0x1b2   : > { %1842 = vst [vmem:[%s2919_s16 + $0xa0] sm:$0xff] %v1721_v7  ;;  %1843 = vst.msk [vmem:[%s2919_s16 + $0xa8] sm:$0xff] %vm1822_vm1, %v1722_v24  ;;  %v1609_v35 = vpop.permute.xlu1 %1608  ;;  %v1373_v24 = vld [vmem:[%s2910_s12 + $0x2e0] sm:$0xff] }
 0x1b3   : > { %v1783_v20 = vmul.f32 %v1609_v35, %v1363_v44  ;;  %v1784_v21 = vmul.f32 %v1609_v35, %v1364_v18  ;;  %v1604_v52 = vpop.permute.xlu0 %1603  ;;  %v1374_v44 = vld [vmem:[%s2910_s12 + $0x2e8] sm:$0xff]  ;;  %v1319_v35 = vld [vmem:[%s2910_s12 + $0x130] sm:$0xff] }
 0x1b4   : > { %v1781_v26 = vmul.f32 %v1604_v52, %v1361_v13  ;;  %v1782_v62 = vmul.f32 %v1604_v52, %v1362_v19 }
 0x1b5   : > { %1904 = vst [vmem:[%s2919_s16 + $0x290] sm:$0xff] %v1783_v20  ;;  %1905 = vst.msk [vmem:[%s2919_s16 + $0x298] sm:$0xff] %vm1822_vm1, %v1784_v21  ;;  %v1320_v20 = vld [vmem:[%s2910_s12 + $0x138] sm:$0xff] }
 0x1b6   : > { %1902 = vst [vmem:[%s2919_s16 + $0x280] sm:$0xff] %v1781_v26  ;;  %1903 = vst.msk [vmem:[%s2919_s16 + $0x288] sm:$0xff] %vm1822_vm1, %v1782_v62  ;;  %v1469_v2 = vpop.permute.xlu1 %1468  ;;  %v1317_v62 = vld [vmem:[%s2910_s12 + $0x120] sm:$0xff] }
 0x1b7   : > { %v1727_v29 = vmul.f32 %v1469_v2, %v1307_v8  ;;  %v1728_v30 = vmul.f32 %v1469_v2, %v1308_v40  ;;  %v1318_v8 = vld [vmem:[%s2910_s12 + $0x128] sm:$0xff] }
 0x1b8   : > { %v1464_v5 = vpop.permute.xlu0 %1463 }
 0x1b9   : > { %1848 = vst [vmem:[%s2919_s16 + $0xd0] sm:$0xff] %v1727_v29  ;;  %1849 = vst.msk [vmem:[%s2919_s16 + $0xd8] sm:$0xff] %vm1822_vm1, %v1728_v30  ;;  %v1725_v23 = vmul.f32 %v1464_v5, %v1305_v27  ;;  %v1726_v37 = vmul.f32 %v1464_v5, %v1306_v17  ;;  %v1379_v17 = vld [vmem:[%s2910_s12 + $0x310] sm:$0xff]  ;;  %v1380_v29 = vld [vmem:[%s2910_s12 + $0x318] sm:$0xff] }
 0x1ba   : > { %v1619_v14 = vpop.permute.xlu1 %1618 }
 0x1bb   : > { %1846 = vst [vmem:[%s2919_s16 + $0xc0] sm:$0xff] %v1725_v23  ;;  %1847 = vst.msk [vmem:[%s2919_s16 + $0xc8] sm:$0xff] %vm1822_vm1, %v1726_v37  ;;  %v1787_v22 = vmul.f32 %v1619_v14, %v1367_v33  ;;  %v1788_v41 = vmul.f32 %v1619_v14, %v1368_v36  ;;  %v1377_v36 = vld [vmem:[%s2910_s12 + $0x300] sm:$0xff]  ;;  %v1378_v23 = vld [vmem:[%s2910_s12 + $0x308] sm:$0xff] }
 0x1bc   : > { %v1614_v42 = vpop.permute.xlu0 %1613 }
 0x1bd   : > { %1908 = vst [vmem:[%s2919_s16 + $0x2b0] sm:$0xff] %v1787_v22  ;;  %1909 = vst.msk [vmem:[%s2919_s16 + $0x2b8] sm:$0xff] %vm1822_vm1, %v1788_v41  ;;  %v1785_v25 = vmul.f32 %v1614_v42, %v1365_v32  ;;  %v1786_v47 = vmul.f32 %v1614_v42, %v1366_v38  ;;  %v1323_v38 = vld [vmem:[%s2910_s12 + $0x150] sm:$0xff]  ;;  %v1324_v22 = vld [vmem:[%s2910_s12 + $0x158] sm:$0xff] }
 0x1be   : > { %v1479_v3 = vpop.permute.xlu1 %1478 }
 0x1bf   : > { %1906 = vst [vmem:[%s2919_s16 + $0x2a0] sm:$0xff] %v1785_v25  ;;  %1907 = vst.msk [vmem:[%s2919_s16 + $0x2a8] sm:$0xff] %vm1822_vm1, %v1786_v47  ;;  %v1731_v55 = vmul.f32 %v1479_v3, %v1311_v46  ;;  %v1732_v53 = vmul.f32 %v1479_v3, %v1312_v45  ;;  %v1321_v45 = vld [vmem:[%s2910_s12 + $0x140] sm:$0xff]  ;;  %v1322_v25 = vld [vmem:[%s2910_s12 + $0x148] sm:$0xff] }
 0x1c0   : > { %v1474_v28 = vpop.permute.xlu0 %1473 }
 0x1c1   : > { %1852 = vst [vmem:[%s2919_s16 + $0xf0] sm:$0xff] %v1731_v55  ;;  %1853 = vst.msk [vmem:[%s2919_s16 + $0xf8] sm:$0xff] %vm1822_vm1, %v1732_v53  ;;  %v1729_v34 = vmul.f32 %v1474_v28, %v1309_v39  ;;  %v1730_v58 = vmul.f32 %v1474_v28, %v1310_v49  ;;  %v1383_v49 = vld [vmem:[%s2910_s12 + $0x330] sm:$0xff]  ;;  %v1384_v55 = vld [vmem:[%s2910_s12 + $0x338] sm:$0xff] }
 0x1c2   : > { %v1629_v60 = vpop.permute.xlu1 %1628 }
 0x1c3   : > { %1850 = vst [vmem:[%s2919_s16 + $0xe0] sm:$0xff] %v1729_v34  ;;  %1851 = vst.msk [vmem:[%s2919_s16 + $0xe8] sm:$0xff] %vm1822_vm1, %v1730_v58  ;;  %v1791_v57 = vmul.f32 %v1629_v60, %v1371_v48  ;;  %v1792_v51 = vmul.f32 %v1629_v60, %v1372_v54  ;;  %v1381_v54 = vld [vmem:[%s2910_s12 + $0x320] sm:$0xff]  ;;  %v1382_v34 = vld [vmem:[%s2910_s12 + $0x328] sm:$0xff] }
 0x1c4   : > { %v1624_v59 = vpop.permute.xlu0 %1623 }
 0x1c5   : > { %1912 = vst [vmem:[%s2919_s16 + $0x2d0] sm:$0xff] %v1791_v57  ;;  %1913 = vst.msk [vmem:[%s2919_s16 + $0x2d8] sm:$0xff] %vm1822_vm1, %v1792_v51  ;;  %v1789_v56 = vmul.f32 %v1624_v59, %v1369_v43  ;;  %v1790_v1 = vmul.f32 %v1624_v59, %v1370_v31  ;;  %v1327_v31 = vld [vmem:[%s2910_s12 + $0x170] sm:$0xff]  ;;  %v1328_v57 = vld [vmem:[%s2910_s12 + $0x178] sm:$0xff] }
 0x1c6   : > { %v1489_v0 = vpop.permute.xlu1 %1488 }
 0x1c7   : > { %1910 = vst [vmem:[%s2919_s16 + $0x2c0] sm:$0xff] %v1789_v56  ;;  %1911 = vst.msk [vmem:[%s2919_s16 + $0x2c8] sm:$0xff] %vm1822_vm1, %v1790_v1  ;;  %v1735_v11 = vmul.f32 %v1489_v0, %v1315_v9  ;;  %v1736_v12 = vmul.f32 %v1489_v0, %v1316_v63  ;;  %v1325_v63 = vld [vmem:[%s2910_s12 + $0x160] sm:$0xff]  ;;  %v1326_v56 = vld [vmem:[%s2910_s12 + $0x168] sm:$0xff] }
 0x1c8   : > { %v1484_v4 = vpop.permute.xlu0 %1483 }
 0x1c9   : > { %1856 = vst [vmem:[%s2919_s16 + $0x110] sm:$0xff] %v1735_v11  ;;  %1857 = vst.msk [vmem:[%s2919_s16 + $0x118] sm:$0xff] %vm1822_vm1, %v1736_v12  ;;  %v1733_v15 = vmul.f32 %v1484_v4, %v1313_v6  ;;  %v1734_v16 = vmul.f32 %v1484_v4, %v1314_v10  ;;  %v1387_v10 = vld [vmem:[%s2910_s12 + $0x350] sm:$0xff]  ;;  %v1388_v11 = vld [vmem:[%s2910_s12 + $0x358] sm:$0xff] }
 0x1ca   : > { %v1639_v7 = vpop.permute.xlu1 %1638 }
 0x1cb   : > { %1854 = vst [vmem:[%s2919_s16 + $0x100] sm:$0xff] %v1733_v15  ;;  %1855 = vst.msk [vmem:[%s2919_s16 + $0x108] sm:$0xff] %vm1822_vm1, %v1734_v16  ;;  %v1795_v18 = vmul.f32 %v1639_v7, %v1375_v50  ;;  %v1796_v13 = vmul.f32 %v1639_v7, %v1376_v61  ;;  %v1385_v61 = vld [vmem:[%s2910_s12 + $0x340] sm:$0xff]  ;;  %v1386_v15 = vld [vmem:[%s2910_s12 + $0x348] sm:$0xff] }
 0x1cc   : > { %v1634_v19 = vpop.permute.xlu0 %1633 }
 0x1cd   : > { %1916 = vst [vmem:[%s2919_s16 + $0x2f0] sm:$0xff] %v1795_v18  ;;  %1917 = vst.msk [vmem:[%s2919_s16 + $0x2f8] sm:$0xff] %vm1822_vm1, %v1796_v13  ;;  %v1793_v21 = vmul.f32 %v1634_v19, %v1373_v24  ;;  %v1794_v52 = vmul.f32 %v1634_v19, %v1374_v44  ;;  %v1331_v44 = vld [vmem:[%s2910_s12 + $0x190] sm:$0xff]  ;;  %v1332_v18 = vld [vmem:[%s2910_s12 + $0x198] sm:$0xff] }
 0x1ce   : > { %v1499_v26 = vpop.permute.xlu1 %1498 }
 0x1cf   : > { %1914 = vst [vmem:[%s2919_s16 + $0x2e0] sm:$0xff] %v1793_v21  ;;  %1915 = vst.msk [vmem:[%s2919_s16 + $0x2e8] sm:$0xff] %vm1822_vm1, %v1794_v52  ;;  %v1739_v40 = vmul.f32 %v1499_v26, %v1319_v35  ;;  %v1740_v2 = vmul.f32 %v1499_v26, %v1320_v20  ;;  %v1329_v20 = vld [vmem:[%s2910_s12 + $0x180] sm:$0xff]  ;;  %v1330_v21 = vld [vmem:[%s2910_s12 + $0x188] sm:$0xff] }
 0x1d0   : > { %v1494_v27 = vpop.permute.xlu0 %1493 }
 0x1d1   : > { %1860 = vst [vmem:[%s2919_s16 + $0x130] sm:$0xff] %v1739_v40  ;;  %1861 = vst.msk [vmem:[%s2919_s16 + $0x138] sm:$0xff] %vm1822_vm1, %v1740_v2  ;;  %v1737_v30 = vmul.f32 %v1494_v27, %v1317_v62  ;;  %v1738_v5 = vmul.f32 %v1494_v27, %v1318_v8  ;;  %v1391_v8 = vld [vmem:[%s2910_s12 + $0x370] sm:$0xff]  ;;  %v1392_v40 = vld [vmem:[%s2910_s12 + $0x378] sm:$0xff] }
 0x1d2   : > { %v1649_v33 = vpop.permute.xlu1 %1648 }
 0x1d3   : > { %1858 = vst [vmem:[%s2919_s16 + $0x120] sm:$0xff] %v1737_v30  ;;  %1859 = vst.msk [vmem:[%s2919_s16 + $0x128] sm:$0xff] %vm1822_vm1, %v1738_v5  ;;  %v1799_v37 = vmul.f32 %v1649_v33, %v1379_v17  ;;  %v1800_v14 = vmul.f32 %v1649_v33, %v1380_v29  ;;  %v1389_v29 = vld [vmem:[%s2910_s12 + $0x360] sm:$0xff]  ;;  %v1390_v30 = vld [vmem:[%s2910_s12 + $0x368] sm:$0xff] }
 0x1d4   : > { %v1644_v32 = vpop.permute.xlu0 %1643 }
 0x1d5   : > { %1920 = vst [vmem:[%s2919_s16 + $0x310] sm:$0xff] %v1799_v37  ;;  %1921 = vst.msk [vmem:[%s2919_s16 + $0x318] sm:$0xff] %vm1822_vm1, %v1800_v14  ;;  %v1797_v41 = vmul.f32 %v1644_v32, %v1377_v36  ;;  %v1798_v42 = vmul.f32 %v1644_v32, %v1378_v23  ;;  %v1335_v23 = vld [vmem:[%s2910_s12 + $0x1b0] sm:$0xff]  ;;  %v1336_v37 = vld [vmem:[%s2910_s12 + $0x1b8] sm:$0xff] }
 0x1d6   : > { %v1509_v46 = vpop.permute.xlu1 %1508 }
 0x1d7   : > { %1918 = vst [vmem:[%s2919_s16 + $0x300] sm:$0xff] %v1797_v41  ;;  %1919 = vst.msk [vmem:[%s2919_s16 + $0x308] sm:$0xff] %vm1822_vm1, %v1798_v42  ;;  %v1743_v47 = vmul.f32 %v1509_v46, %v1323_v38  ;;  %v1744_v3 = vmul.f32 %v1509_v46, %v1324_v22  ;;  %v1333_v22 = vld [vmem:[%s2910_s12 + $0x1a0] sm:$0xff]  ;;  %v1334_v41 = vld [vmem:[%s2910_s12 + $0x1a8] sm:$0xff] }
 0x1d8   : > { %v1504_v39 = vpop.permute.xlu0 %1503 }
 0x1d9   : > { %1864 = vst [vmem:[%s2919_s16 + $0x150] sm:$0xff] %v1743_v47  ;;  %1865 = vst.msk [vmem:[%s2919_s16 + $0x158] sm:$0xff] %vm1822_vm1, %v1744_v3  ;;  %v1741_v53 = vmul.f32 %v1504_v39, %v1321_v45  ;;  %v1742_v28 = vmul.f32 %v1504_v39, %v1322_v25  ;;  %v1395_v25 = vld [vmem:[%s2910_s12 + $0x390] sm:$0xff]  ;;  %v1396_v47 = vld [vmem:[%s2910_s12 + $0x398] sm:$0xff] }
 0x1da   : > { %v1659_v48 = vpop.permute.xlu1 %1658 }
 0x1db   : > { %1862 = vst [vmem:[%s2919_s16 + $0x140] sm:$0xff] %v1741_v53  ;;  %1863 = vst.msk [vmem:[%s2919_s16 + $0x148] sm:$0xff] %vm1822_vm1, %v1742_v28  ;;  %v1803_v58 = vmul.f32 %v1659_v48, %v1383_v49  ;;  %v1804_v60 = vmul.f32 %v1659_v48, %v1384_v55  ;;  %v1393_v55 = vld [vmem:[%s2910_s12 + $0x380] sm:$0xff]  ;;  %v1394_v53 = vld [vmem:[%s2910_s12 + $0x388] sm:$0xff] }
 0x1dc   : > { %v1654_v43 = vpop.permute.xlu0 %1653 }
 0x1dd   : > { %1924 = vst [vmem:[%s2919_s16 + $0x330] sm:$0xff] %v1803_v58  ;;  %1925 = vst.msk [vmem:[%s2919_s16 + $0x338] sm:$0xff] %vm1822_vm1, %v1804_v60  ;;  %v1801_v51 = vmul.f32 %v1654_v43, %v1381_v54  ;;  %v1802_v59 = vmul.f32 %v1654_v43, %v1382_v34  ;;  %v1339_v34 = vld [vmem:[%s2910_s12 + $0x1d0] sm:$0xff]  ;;  %v1340_v58 = vld [vmem:[%s2910_s12 + $0x1d8] sm:$0xff] }
 0x1de   : > { %v1519_v9 = vpop.permute.xlu1 %1518 }
 0x1df   : > { %1922 = vst [vmem:[%s2919_s16 + $0x320] sm:$0xff] %v1801_v51  ;;  %1923 = vst.msk [vmem:[%s2919_s16 + $0x328] sm:$0xff] %vm1822_vm1, %v1802_v59  ;;  %v1747_v1 = vmul.f32 %v1519_v9, %v1327_v31  ;;  %v1748_v0 = vmul.f32 %v1519_v9, %v1328_v57  ;;  %v1337_v57 = vld [vmem:[%s2910_s12 + $0x1c0] sm:$0xff]  ;;  %v1338_v51 = vld [vmem:[%s2910_s12 + $0x1c8] sm:$0xff] }
 0x1e0   : > { %v1514_v6 = vpop.permute.xlu0 %1513 }
 0x1e1   : > { %1868 = vst [vmem:[%s2919_s16 + $0x170] sm:$0xff] %v1747_v1  ;;  %1869 = vst.msk [vmem:[%s2919_s16 + $0x178] sm:$0xff] %vm1822_vm1, %v1748_v0  ;;  %v1745_v12 = vmul.f32 %v1514_v6, %v1325_v63  ;;  %v1746_v4 = vmul.f32 %v1514_v6, %v1326_v56  ;;  %v1399_v56 = vld [vmem:[%s2910_s12 + $0x3b0] sm:$0xff]  ;;  %v1400_v1 = vld [vmem:[%s2910_s12 + $0x3b8] sm:$0xff] }
 0x1e2   : > { %v1669_v50 = vpop.permute.xlu1 %1668 }
 0x1e3   : > { %1866 = vst [vmem:[%s2919_s16 + $0x160] sm:$0xff] %v1745_v12  ;;  %1867 = vst.msk [vmem:[%s2919_s16 + $0x168] sm:$0xff] %vm1822_vm1, %v1746_v4  ;;  %v1807_v16 = vmul.f32 %v1669_v50, %v1387_v10  ;;  %v1808_v7 = vmul.f32 %v1669_v50, %v1388_v11  ;;  %v1397_v11 = vld [vmem:[%s2910_s12 + $0x3a0] sm:$0xff]  ;;  %v1398_v12 = vld [vmem:[%s2910_s12 + $0x3a8] sm:$0xff] }
 0x1e4   : > { %v1664_v24 = vpop.permute.xlu0 %1663 }
 0x1e5   : > { %1928 = vst [vmem:[%s2919_s16 + $0x350] sm:$0xff] %v1807_v16  ;;  %1929 = vst.msk [vmem:[%s2919_s16 + $0x358] sm:$0xff] %vm1822_vm1, %v1808_v7  ;;  %v1805_v13 = vmul.f32 %v1664_v24, %v1385_v61  ;;  %v1806_v19 = vmul.f32 %v1664_v24, %v1386_v15 }
 0x1e6   : > { %v1529_v35 = vpop.permute.xlu1 %1528 }
 0x1e7   : > { %1926 = vst [vmem:[%s2919_s16 + $0x340] sm:$0xff] %v1805_v13  ;;  %1927 = vst.msk [vmem:[%s2919_s16 + $0x348] sm:$0xff] %vm1822_vm1, %v1806_v19  ;;  %v1751_v52 = vmul.f32 %v1529_v35, %v1331_v44  ;;  %v1752_v26 = vmul.f32 %v1529_v35, %v1332_v18 }
 0x1e8   : > { %v1524_v62 = vpop.permute.xlu0 %1523 }
 0x1e9   : > { %1872 = vst [vmem:[%s2919_s16 + $0x190] sm:$0xff] %v1751_v52  ;;  %1873 = vst.msk [vmem:[%s2919_s16 + $0x198] sm:$0xff] %vm1822_vm1, %v1752_v26  ;;  %v1749_v2 = vmul.f32 %v1524_v62, %v1329_v20  ;;  %v1750_v27 = vmul.f32 %v1524_v62, %v1330_v21 }
 0x1ea   : > { %v1679_v17 = vpop.permute.xlu1 %1678 }
 0x1eb   : > { %1870 = vst [vmem:[%s2919_s16 + $0x180] sm:$0xff] %v1749_v2  ;;  %1871 = vst.msk [vmem:[%s2919_s16 + $0x188] sm:$0xff] %vm1822_vm1, %v1750_v27  ;;  %v1811_v5 = vmul.f32 %v1679_v17, %v1391_v8  ;;  %v1812_v33 = vmul.f32 %v1679_v17, %v1392_v40 }
 0x1ec   : > { %v1674_v36 = vpop.permute.xlu0 %1673 }
 0x1ed   : > { %1932 = vst [vmem:[%s2919_s16 + $0x370] sm:$0xff] %v1811_v5  ;;  %1933 = vst.msk [vmem:[%s2919_s16 + $0x378] sm:$0xff] %vm1822_vm1, %v1812_v33  ;;  %v1809_v14 = vmul.f32 %v1674_v36, %v1389_v29  ;;  %v1810_v32 = vmul.f32 %v1674_v36, %v1390_v30 }
 0x1ee   : > { %v1539_v38 = vpop.permute.xlu1 %1538 }
 0x1ef   : > { %1930 = vst [vmem:[%s2919_s16 + $0x360] sm:$0xff] %v1809_v14  ;;  %1931 = vst.msk [vmem:[%s2919_s16 + $0x368] sm:$0xff] %vm1822_vm1, %v1810_v32  ;;  %v1755_v42 = vmul.f32 %v1539_v38, %v1335_v23  ;;  %v1756_v46 = vmul.f32 %v1539_v38, %v1336_v37 }
 0x1f0   : > { %v1534_v45 = vpop.permute.xlu0 %1533 }
 0x1f1   : > { %1876 = vst [vmem:[%s2919_s16 + $0x1b0] sm:$0xff] %v1755_v42  ;;  %1877 = vst.msk [vmem:[%s2919_s16 + $0x1b8] sm:$0xff] %vm1822_vm1, %v1756_v46  ;;  %v1753_v3 = vmul.f32 %v1534_v45, %v1333_v22  ;;  %v1754_v39 = vmul.f32 %v1534_v45, %v1334_v41 }
 0x1f2   : > { %v1689_v49 = vpop.permute.xlu1 %1688 }
 0x1f3   : > { %1874 = vst [vmem:[%s2919_s16 + $0x1a0] sm:$0xff] %v1753_v3  ;;  %1875 = vst.msk [vmem:[%s2919_s16 + $0x1a8] sm:$0xff] %vm1822_vm1, %v1754_v39  ;;  %v1815_v28 = vmul.f32 %v1689_v49, %v1395_v25  ;;  %v1816_v48 = vmul.f32 %v1689_v49, %v1396_v47 }
 0x1f4   : > { %v1684_v54 = vpop.permute.xlu0 %1683 }
 0x1f5   : > { %1936 = vst [vmem:[%s2919_s16 + $0x390] sm:$0xff] %v1815_v28  ;;  %1937 = vst.msk [vmem:[%s2919_s16 + $0x398] sm:$0xff] %vm1822_vm1, %v1816_v48  ;;  %v1813_v60 = vmul.f32 %v1684_v54, %v1393_v55  ;;  %v1814_v43 = vmul.f32 %v1684_v54, %v1394_v53 }
 0x1f6   : > { %v1549_v31 = vpop.permute.xlu1 %1548 }
 0x1f7   : > { %1934 = vst [vmem:[%s2919_s16 + $0x380] sm:$0xff] %v1813_v60  ;;  %1935 = vst.msk [vmem:[%s2919_s16 + $0x388] sm:$0xff] %vm1822_vm1, %v1814_v43  ;;  %v1759_v59 = vmul.f32 %v1549_v31, %v1339_v34  ;;  %v1760_v9 = vmul.f32 %v1549_v31, %v1340_v58 }
 0x1f8   : > { %v1544_v63 = vpop.permute.xlu0 %1543 }
 0x1f9   : > { %1880 = vst [vmem:[%s2919_s16 + $0x1d0] sm:$0xff] %v1759_v59  ;;  %1881 = vst.msk [vmem:[%s2919_s16 + $0x1d8] sm:$0xff] %vm1822_vm1, %v1760_v9  ;;  %v1757_v0 = vmul.f32 %v1544_v63, %v1337_v57  ;;  %v1758_v6 = vmul.f32 %v1544_v63, %v1338_v51 }
 0x1fa   : > { %v1699_v10 = vpop.permute.xlu1 %1698 }
 0x1fb   : > { %1878 = vst [vmem:[%s2919_s16 + $0x1c0] sm:$0xff] %v1757_v0  ;;  %1879 = vst.msk [vmem:[%s2919_s16 + $0x1c8] sm:$0xff] %vm1822_vm1, %v1758_v6  ;;  %v1819_v4 = vmul.f32 %v1699_v10, %v1399_v56  ;;  %v1820_v50 = vmul.f32 %v1699_v10, %v1400_v1 }
 0x1fc   : > { %v1694_v61 = vpop.permute.xlu0 %1693 }
 0x1fd   : > { %1940 = vst [vmem:[%s2919_s16 + $0x3b0] sm:$0xff] %v1819_v4  ;;  %1941 = vst.msk [vmem:[%s2919_s16 + $0x3b8] sm:$0xff] %vm1822_vm1, %v1820_v50  ;;  %v1817_v15 = vmul.f32 %v1694_v61, %v1397_v11  ;;  %v1818_v16 = vmul.f32 %v1694_v61, %v1398_v12 }
 0x1ff   : > { %1938 = vst [vmem:[%s2919_s16 + $0x3a0] sm:$0xff] %v1817_v15  ;;  %1939 = vst.msk [vmem:[%s2919_s16 + $0x3a8] sm:$0xff] %vm1822_vm1, %v1818_v16 }
 0x200 PF: > { %s14_s15 = sadd.s32 1, %s2535_s15  }
 0x201   : > { %p11_p4 = scmp.ge.s32.totalorder %s14_s15, 4  }
 0x203   :  { %13 = sbr.rel (!%p11_p4) target bundleno = 1 (0x1), region = 72 }

</bundles_post_ra>
